<compile_context>
chip_gen: v6e
topology: v6e:2x2x1
jax: 0.10.0
libtpu: 0.0.40
codegen_flags: <defaults>
</compile_context>

<pallas_src>
import jax
import jax.numpy as jnp
from jax.experimental import pallas as pl
from jax.experimental.pallas import tpu as pltpu

BN_EPS = 1e-5


def _round_up(x, m):
    return ((x + m - 1) // m) * m


def _choose_tm(M):
    # Large M-tiles amortize the ~0.35us per-grid-step overhead; keep at least two
    # grid steps when there is enough work so megacore parts both get a share.
    if M <= 256:
        return _round_up(M, 8)
    return min(512, _round_up((M + 1) // 2, 8))


# ----------------------------- Pallas kernels -----------------------------

def _conv_bn_relu_kernel(p_ref, w_ref, b_ref, o_ref):
    # p_ref: (TM, K) bf16 im2col patches, w_ref: (K, Cout) bf16 BN-folded weights,
    # b_ref: (1, Cout) f32 BN-folded bias.  MXU matmul with f32 accumulation.
    acc = jnp.dot(p_ref[...], w_ref[...], preferred_element_type=jnp.float32)
    o_ref[...] = jnp.maximum(acc + b_ref[...], 0.0).astype(o_ref.dtype)


def _maxpool_kernel(x_ref, o_ref):
    # x_ref: (R, 2, Wo, 2, C) — R pooled output rows' worth of 2x2 windows.
    x = x_ref[...]
    m = jnp.maximum(x[:, 0], x[:, 1])    # vertical pair     -> (R, Wo, 2, C)
    o_ref[...] = jnp.max(m, axis=2)      # horizontal pair   -> (R, Wo, C)


# ----------------------------- layer wrappers ------------------------------

def conv_bn_relu(x_nhwc, w_hwio, gamma, beta, mean, var, stride, out_dtype):
    """3x3 conv (pad=1, given stride, no conv bias) + BN(eval, folded) + ReLU."""
    N, H, W, Cin = x_nhwc.shape
    kh, kw, _, Cout = w_hwio.shape
    pad = 1
    Ho = (H + 2 * pad - kh) // stride + 1
    Wo = (W + 2 * pad - kw) // stride + 1

    # Pad ragged input channels (the Cin=3 first layer) to a multiple of 8 so the
    # contraction packs cleanly; padded channels are zero and matched by zero
    # weight rows, so results are exact.
    cin_p = _round_up(Cin, 8)
    if cin_p != Cin:
        x_nhwc = jnp.pad(x_nhwc, ((0, 0), (0, 0), (0, 0), (0, cin_p - Cin)))
        w_hwio = jnp.pad(w_hwio, ((0, 0), (0, 0), (0, cin_p - Cin), (0, 0)))

    # ---- glue: im2col (data layout only, no arithmetic) ----
    xp = jnp.pad(x_nhwc, ((0, 0), (pad, pad), (pad, pad), (0, 0)))
    cols = []
    for dy in range(kh):
        for dx in range(kw):
            cols.append(xp[:,
                           dy:dy + stride * (Ho - 1) + 1:stride,
                           dx:dx + stride * (Wo - 1) + 1:stride, :])
    K = kh * kw * cin_p
    patches = jnp.stack(cols, axis=3).reshape(N * Ho * Wo, K)

    # ---- fold BN (eval mode) into weights / bias ----
    inv_std = 1.0 / jnp.sqrt(var + BN_EPS)
    scale = (gamma * inv_std).astype(jnp.float32)                       # (Cout,)
    wmat = w_hwio.reshape(K, Cout).astype(jnp.float32) * scale[None, :]
    bias = (beta - mean * scale).reshape(1, Cout).astype(jnp.float32)

    # bf16 operands into the MXU (native path), f32 accumulation in-kernel;
    # BN bias stays f32 so accuracy is unaffected.
    patches = patches.astype(jnp.bfloat16)
    wmat = wmat.astype(jnp.bfloat16)

    # ---- tiling: big M tiles, zero-padding for the tail (no asserts) ----
    M = N * Ho * Wo
    TM = _choose_tm(M)
    Mp = _round_up(M, TM)
    if Mp != M:
        patches = jnp.pad(patches, ((0, Mp - M), (0, 0)))
    n_tiles = Mp // TM

    out_isize = jnp.dtype(out_dtype).itemsize
    flops = 2 * Mp * K * Cout
    bytes_accessed = Mp * K * 2 + K * Cout * 2 + Cout * 4 + Mp * Cout * out_isize

    out = pl.pallas_call(
        _conv_bn_relu_kernel,
        out_shape=jax.ShapeDtypeStruct((Mp, Cout), out_dtype),
        grid_spec=pltpu.PrefetchScalarGridSpec(
            num_scalar_prefetch=0,
            grid=(n_tiles,),
            in_specs=[
                pl.BlockSpec((TM, K), lambda i: (i, 0)),
                pl.BlockSpec((K, Cout), lambda i: (0, 0)),
                pl.BlockSpec((1, Cout), lambda i: (0, 0)),
            ],
            out_specs=pl.BlockSpec((TM, Cout), lambda i: (i, 0)),
        ),
        compiler_params=pltpu.CompilerParams(
            dimension_semantics=("parallel",)),
        cost_estimate=pl.CostEstimate(
            flops=flops, transcendentals=0, bytes_accessed=bytes_accessed),
    )(patches, wmat, bias)

    if Mp != M:
        out = out[:M]
    return out.reshape(N, Ho, Wo, Cout)


def maxpool_2x2_ceil(x_nhwc):
    """MaxPool2d(kernel=2, stride=2, ceil_mode=True)."""
    N, H, W, C = x_nhwc.shape
    Ho, Wo = -(-H // 2), -(-W // 2)
    ph, pw = Ho * 2 - H, Wo * 2 - W
    if ph or pw:  # ceil_mode: pad with -inf so partial windows ignore the filler
        x_nhwc = jnp.pad(x_nhwc, ((0, 0), (0, ph), (0, pw), (0, 0)),
                         constant_values=-jnp.inf)

    # Free reshape (pure dim split): (N, 2*Ho, 2*Wo, C) -> (N*Ho, 2, Wo, 2, C).
    # Tap copies never hit HBM; the grid pipelines the HBM traffic.
    rows = N * Ho
    xr = x_nhwc.reshape(rows, 2, Wo, 2, C)

    # Many pooled rows per grid step (~2 MiB blocks) to amortize per-step overhead.
    bytes_per_row = 2 * Wo * 2 * C * xr.dtype.itemsize
    R = max(1, min(rows, (2 * 1024 * 1024) // max(1, bytes_per_row)))
    rows_p = _round_up(rows, R)
    if rows_p != rows:  # padded rows form whole extra output rows that get sliced off
        xr = jnp.pad(xr, ((0, rows_p - rows), (0, 0), (0, 0), (0, 0), (0, 0)))
    n_tiles = rows_p // R

    out = pl.pallas_call(
        _maxpool_kernel,
        out_shape=jax.ShapeDtypeStruct((rows_p, Wo, C), x_nhwc.dtype),
        grid_spec=pltpu.PrefetchScalarGridSpec(
            num_scalar_prefetch=0,
            grid=(n_tiles,),
            in_specs=[pl.BlockSpec((R, 2, Wo, 2, C),
                                   lambda i: (i, 0, 0, 0, 0))],
            out_specs=pl.BlockSpec((R, Wo, C), lambda i: (i, 0, 0)),
        ),
        compiler_params=pltpu.CompilerParams(
            dimension_semantics=("parallel",)),
    )(xr)

    if rows_p != rows:
        out = out[:rows]
    return out.reshape(N, Ho, Wo, C)


# ----------------------------- model ---------------------------------------

# (Cin, Cout, stride) for every ConvBNReLU, in forward order.
_LAYER_CFG = [
    (3, 64, 2), (64, 64, 1),                       # Stage1
    (64, 64, 2), (64, 64, 1), (64, 64, 1),         # Stage2
    (64, 128, 1), (128, 128, 1), (128, 128, 1),    # Stage3 (then maxpool)
]


def init_params(key):
    params = []
    for cin, cout, _stride in _LAYER_CFG:
        key, sub = jax.random.split(key)
        # kaiming_normal_(mode='fan_out') for a 3x3 conv: std = sqrt(2 / (Cout*3*3))
        std = (2.0 / (cout * 9)) ** 0.5
        w = jax.random.normal(sub, (3, 3, cin, cout), jnp.float32) * std  # HWIO
        params.append(dict(
            w=w,
            gamma=jnp.ones((cout,), jnp.float32),
            beta=jnp.zeros((cout,), jnp.float32),
            mean=jnp.zeros((cout,), jnp.float32),
            var=jnp.ones((cout,), jnp.float32),
        ))
    return params


def high_resolution_branch(x_nchw, params):
    # layout: NCHW in -> NHWC internally -> NCHW out (matches PyTorch axes).
    x = jnp.transpose(x_nchw, (0, 2, 3, 1)).astype(jnp.float32)
    n_layers = len(_LAYER_CFG)
    for li, (p, (_cin, _cout, stride)) in enumerate(zip(params, _LAYER_CFG)):
        # Intermediate activations live in bf16 (the next layer's MXU reads bf16
        # anyway); the final pre-pool activation stays f32 to preserve output precision.
        out_dtype = jnp.float32 if li == n_layers - 1 else jnp.bfloat16
        x = conv_bn_relu(x, p["w"], p["gamma"], p["beta"], p["mean"], p["var"],
                         stride, out_dtype)
    x = maxpool_2x2_ceil(x)
    return jnp.transpose(x, (0, 3, 1, 2))


# ----------------------------- main -----------------------------------------

if __name__ == "__main__":
    key = jax.random.PRNGKey(0)
    k_params, k_x = jax.random.split(key)
    params = init_params(k_params)

    x = jax.random.normal(k_x, (2, 3, 16, 16), jnp.float32)  # NCHW, like PyTorch

    fwd = jax.jit(high_resolution_branch)
    out = jax.block_until_ready(fwd(x, params))

    # Expected: 16 -> 8 (Stage1 s=2) -> 4 (Stage2 s=2) -> 4 -> 2 (maxpool ceil)
    assert out.shape == (2, 128, 2, 2), out.shape
    assert out.dtype == jnp.float32
    assert bool(jnp.all(jnp.isfinite(out)))
    print("KERNEL_OK")
</pallas_src>

<mosaic_0001>
module attributes {stable_mosaic.version = 11 : i64} {
  func.func @_conv_bn_relu_kernel(%arg0: i32, %arg1: memref<128x72xbf16, #tpu.memory_space<vmem>>, %arg2: memref<72x64xbf16, #tpu.memory_space<vmem>>, %arg3: memref<1x64xf32, #tpu.memory_space<vmem>>, %arg4: memref<128x64xbf16, #tpu.memory_space<vmem>>) attributes {dimension_semantics = [#tpu.dimension_semantics<parallel>], iteration_bounds = array<i64: 1>, scalar_prefetch = 0 : i64, scratch_operands = 0 : i64, tpu.core_type = #tpu.core_type<tc>, window_params = [{transform_indices = @transform_0, window_bounds = array<i64: 128, 72>}, {pipeline_mode = #tpu.pipeline_mode<synchronous>, transform_indices = @transform_1, window_bounds = array<i64: 72, 64>}, {pipeline_mode = #tpu.pipeline_mode<synchronous>, transform_indices = @transform_2, window_bounds = array<i64: 1, 64>}, {transform_indices = @transform_3, window_bounds = array<i64: 128, 64>}]} {
    %c0 = arith.constant 0 : index
    %c0_0 = arith.constant 0 : index
    %0 = vector.load %arg1[%c0, %c0_0] : memref<128x72xbf16, #tpu.memory_space<vmem>>, vector<128x72xbf16>
    %c0_1 = arith.constant 0 : index
    %c0_2 = arith.constant 0 : index
    %1 = vector.load %arg2[%c0_1, %c0_2] : memref<72x64xbf16, #tpu.memory_space<vmem>>, vector<72x64xbf16>
    %cst = arith.constant dense<0.000000e+00> : vector<128x64xf32>
    %2 = tpu.matmul %0, %1, %cst {dimension_numbers = #tpu.dot_dimension_numbers<[1], [0], [0], [1], [0, 0, 1, 1], [], []>} : vector<128x72xbf16>, vector<72x64xbf16>, vector<128x64xf32> -> vector<128x64xf32>
    %c0_3 = arith.constant 0 : index
    %c0_4 = arith.constant 0 : index
    %3 = vector.load %arg3[%c0_3, %c0_4] : memref<1x64xf32, #tpu.memory_space<vmem>>, vector<1x64xf32>
    %4 = vector.broadcast %3 : vector<1x64xf32> to vector<128x64xf32>
    %5 = arith.addf %2, %4 : vector<128x64xf32>
    %cst_5 = arith.constant 0.000000e+00 : f32
    %6 = vector.broadcast %cst_5 : f32 to vector<128x64xf32>
    %7 = arith.maximumf %5, %6 : vector<128x64xf32>
    %8 = arith.truncf %7 : vector<128x64xf32> to vector<128x64xbf16>
    %c0_6 = arith.constant 0 : index
    %c0_7 = arith.constant 0 : index
    %9 = vector.load %arg4[%c0_6, %c0_7] : memref<128x64xbf16, #tpu.memory_space<vmem>>, vector<128x64xbf16>
    tpu.vector_store %arg4[%c0_6, %c0_7], %8 {strides = array<i32>} : memref<128x64xbf16, #tpu.memory_space<vmem>>, vector<128x64xbf16>,
    return
  }
  func.func @transform_0(%arg0: i32) -> (i32, i32) {
    %c0_i32 = arith.constant 0 : i32
    %c0_i32_0 = arith.constant 0 : i32
    return %arg0, %c0_i32 : i32, i32
  }
  func.func @transform_1(%arg0: i32) -> (i32, i32) {
    %c0_i32 = arith.constant 0 : i32
    %c0_i32_0 = arith.constant 0 : i32
    %c0_i32_1 = arith.constant 0 : i32
    return %c0_i32, %c0_i32_0 : i32, i32
  }
  func.func @transform_2(%arg0: i32) -> (i32, i32) {
    %c0_i32 = arith.constant 0 : i32
    %c0_i32_0 = arith.constant 0 : i32
    %c0_i32_1 = arith.constant 0 : i32
    return %c0_i32, %c0_i32_0 : i32, i32
  }
  func.func @transform_3(%arg0: i32) -> (i32, i32) {
    %c0_i32 = arith.constant 0 : i32
    %c0_i32_0 = arith.constant 0 : i32
    return %arg0, %c0_i32 : i32, i32
  }
}

module attributes {stable_mosaic.version = 11 : i64} {
  func.func @_conv_bn_relu_kernel(%arg0: i32, %arg1: memref<128x576xbf16, #tpu.memory_space<vmem>>, %arg2: memref<576x64xbf16, #tpu.memory_space<vmem>>, %arg3: memref<1x64xf32, #tpu.memory_space<vmem>>, %arg4: memref<128x64xbf16, #tpu.memory_space<vmem>>) attributes {dimension_semantics = [#tpu.dimension_semantics<parallel>], iteration_bounds = array<i64: 1>, scalar_prefetch = 0 : i64, scratch_operands = 0 : i64, tpu.core_type = #tpu.core_type<tc>, window_params = [{transform_indices = @transform_0, window_bounds = array<i64: 128, 576>}, {pipeline_mode = #tpu.pipeline_mode<synchronous>, transform_indices = @transform_1, window_bounds = array<i64: 576, 64>}, {pipeline_mode = #tpu.pipeline_mode<synchronous>, transform_indices = @transform_2, window_bounds = array<i64: 1, 64>}, {transform_indices = @transform_3, window_bounds = array<i64: 128, 64>}]} {
    %c0 = arith.constant 0 : index
    %c0_0 = arith.constant 0 : index
    %0 = vector.load %arg1[%c0, %c0_0] : memref<128x576xbf16, #tpu.memory_space<vmem>>, vector<128x576xbf16>
    %c0_1 = arith.constant 0 : index
    %c0_2 = arith.constant 0 : index
    %1 = vector.load %arg2[%c0_1, %c0_2] : memref<576x64xbf16, #tpu.memory_space<vmem>>, vector<576x64xbf16>
    %cst = arith.constant dense<0.000000e+00> : vector<128x64xf32>
    %2 = tpu.matmul %0, %1, %cst {dimension_numbers = #tpu.dot_dimension_numbers<[1], [0], [0], [1], [0, 0, 1, 1], [], []>} : vector<128x576xbf16>, vector<576x64xbf16>, vector<128x64xf32> -> vector<128x64xf32>
    %c0_3 = arith.constant 0 : index
    %c0_4 = arith.constant 0 : index
    %3 = vector.load %arg3[%c0_3, %c0_4] : memref<1x64xf32, #tpu.memory_space<vmem>>, vector<1x64xf32>
    %4 = vector.broadcast %3 : vector<1x64xf32> to vector<128x64xf32>
    %5 = arith.addf %2, %4 : vector<128x64xf32>
    %cst_5 = arith.constant 0.000000e+00 : f32
    %6 = vector.broadcast %cst_5 : f32 to vector<128x64xf32>
    %7 = arith.maximumf %5, %6 : vector<128x64xf32>
    %8 = arith.truncf %7 : vector<128x64xf32> to vector<128x64xbf16>
    %c0_6 = arith.constant 0 : index
    %c0_7 = arith.constant 0 : index
    %9 = vector.load %arg4[%c0_6, %c0_7] : memref<128x64xbf16, #tpu.memory_space<vmem>>, vector<128x64xbf16>
    tpu.vector_store %arg4[%c0_6, %c0_7], %8 {strides = array<i32>} : memref<128x64xbf16, #tpu.memory_space<vmem>>, vector<128x64xbf16>,
    return
  }
  func.func @transform_0(%arg0: i32) -> (i32, i32) {
    %c0_i32 = arith.constant 0 : i32
    %c0_i32_0 = arith.constant 0 : i32
    return %arg0, %c0_i32 : i32, i32
  }
  func.func @transform_1(%arg0: i32) -> (i32, i32) {
    %c0_i32 = arith.constant 0 : i32
    %c0_i32_0 = arith.constant 0 : i32
    %c0_i32_1 = arith.constant 0 : i32
    return %c0_i32, %c0_i32_0 : i32, i32
  }
  func.func @transform_2(%arg0: i32) -> (i32, i32) {
    %c0_i32 = arith.constant 0 : i32
    %c0_i32_0 = arith.constant 0 : i32
    %c0_i32_1 = arith.constant 0 : i32
    return %c0_i32, %c0_i32_0 : i32, i32
  }
  func.func @transform_3(%arg0: i32) -> (i32, i32) {
    %c0_i32 = arith.constant 0 : i32
    %c0_i32_0 = arith.constant 0 : i32
    return %arg0, %c0_i32 : i32, i32
  }
}

module attributes {stable_mosaic.version = 11 : i64} {
  func.func @_conv_bn_relu_kernel(%arg0: i32, %arg1: memref<32x576xbf16, #tpu.memory_space<vmem>>, %arg2: memref<576x64xbf16, #tpu.memory_space<vmem>>, %arg3: memref<1x64xf32, #tpu.memory_space<vmem>>, %arg4: memref<32x64xbf16, #tpu.memory_space<vmem>>) attributes {dimension_semantics = [#tpu.dimension_semantics<parallel>], iteration_bounds = array<i64: 1>, scalar_prefetch = 0 : i64, scratch_operands = 0 : i64, tpu.core_type = #tpu.core_type<tc>, window_params = [{transform_indices = @transform_0, window_bounds = array<i64: 32, 576>}, {pipeline_mode = #tpu.pipeline_mode<synchronous>, transform_indices = @transform_1, window_bounds = array<i64: 576, 64>}, {pipeline_mode = #tpu.pipeline_mode<synchronous>, transform_indices = @transform_2, window_bounds = array<i64: 1, 64>}, {transform_indices = @transform_3, window_bounds = array<i64: 32, 64>}]} {
    %c0 = arith.constant 0 : index
    %c0_0 = arith.constant 0 : index
    %0 = vector.load %arg1[%c0, %c0_0] : memref<32x576xbf16, #tpu.memory_space<vmem>>, vector<32x576xbf16>
    %c0_1 = arith.constant 0 : index
    %c0_2 = arith.constant 0 : index
    %1 = vector.load %arg2[%c0_1, %c0_2] : memref<576x64xbf16, #tpu.memory_space<vmem>>, vector<576x64xbf16>
    %cst = arith.constant dense<0.000000e+00> : vector<32x64xf32>
    %2 = tpu.matmul %0, %1, %cst {dimension_numbers = #tpu.dot_dimension_numbers<[1], [0], [0], [1], [0, 0, 1, 1], [], []>} : vector<32x576xbf16>, vector<576x64xbf16>, vector<32x64xf32> -> vector<32x64xf32>
    %c0_3 = arith.constant 0 : index
    %c0_4 = arith.constant 0 : index
    %3 = vector.load %arg3[%c0_3, %c0_4] : memref<1x64xf32, #tpu.memory_space<vmem>>, vector<1x64xf32>
    %4 = vector.broadcast %3 : vector<1x64xf32> to vector<32x64xf32>
    %5 = arith.addf %2, %4 : vector<32x64xf32>
    %cst_5 = arith.constant 0.000000e+00 : f32
    %6 = vector.broadcast %cst_5 : f32 to vector<32x64xf32>
    %7 = arith.maximumf %5, %6 : vector<32x64xf32>
    %8 = arith.truncf %7 : vector<32x64xf32> to vector<32x64xbf16>
    %c0_6 = arith.constant 0 : index
    %c0_7 = arith.constant 0 : index
    %9 = vector.load %arg4[%c0_6, %c0_7] : memref<32x64xbf16, #tpu.memory_space<vmem>>, vector<32x64xbf16>
    tpu.vector_store %arg4[%c0_6, %c0_7], %8 {strides = array<i32>} : memref<32x64xbf16, #tpu.memory_space<vmem>>, vector<32x64xbf16>,
    return
  }
  func.func @transform_0(%arg0: i32) -> (i32, i32) {
    %c0_i32 = arith.constant 0 : i32
    %c0_i32_0 = arith.constant 0 : i32
    return %arg0, %c0_i32 : i32, i32
  }
  func.func @transform_1(%arg0: i32) -> (i32, i32) {
    %c0_i32 = arith.constant 0 : i32
    %c0_i32_0 = arith.constant 0 : i32
    %c0_i32_1 = arith.constant 0 : i32
    return %c0_i32, %c0_i32_0 : i32, i32
  }
  func.func @transform_2(%arg0: i32) -> (i32, i32) {
    %c0_i32 = arith.constant 0 : i32
    %c0_i32_0 = arith.constant 0 : i32
    %c0_i32_1 = arith.constant 0 : i32
    return %c0_i32, %c0_i32_0 : i32, i32
  }
  func.func @transform_3(%arg0: i32) -> (i32, i32) {
    %c0_i32 = arith.constant 0 : i32
    %c0_i32_0 = arith.constant 0 : i32
    return %arg0, %c0_i32 : i32, i32
  }
}

module attributes {stable_mosaic.version = 11 : i64} {
  func.func @_conv_bn_relu_kernel(%arg0: i32, %arg1: memref<32x576xbf16, #tpu.memory_space<vmem>>, %arg2: memref<576x128xbf16, #tpu.memory_space<vmem>>, %arg3: memref<1x128xf32, #tpu.memory_space<vmem>>, %arg4: memref<32x128xbf16, #tpu.memory_space<vmem>>) attributes {dimension_semantics = [#tpu.dimension_semantics<parallel>], iteration_bounds = array<i64: 1>, scalar_prefetch = 0 : i64, scratch_operands = 0 : i64, tpu.core_type = #tpu.core_type<tc>, window_params = [{transform_indices = @transform_0, window_bounds = array<i64: 32, 576>}, {pipeline_mode = #tpu.pipeline_mode<synchronous>, transform_indices = @transform_1, window_bounds = array<i64: 576, 128>}, {pipeline_mode = #tpu.pipeline_mode<synchronous>, transform_indices = @transform_2, window_bounds = array<i64: 1, 128>}, {transform_indices = @transform_3, window_bounds = array<i64: 32, 128>}]} {
    %c0 = arith.constant 0 : index
    %c0_0 = arith.constant 0 : index
    %0 = vector.load %arg1[%c0, %c0_0] : memref<32x576xbf16, #tpu.memory_space<vmem>>, vector<32x576xbf16>
    %c0_1 = arith.constant 0 : index
    %c0_2 = arith.constant 0 : index
    %1 = vector.load %arg2[%c0_1, %c0_2] : memref<576x128xbf16, #tpu.memory_space<vmem>>, vector<576x128xbf16>
    %cst = arith.constant dense<0.000000e+00> : vector<32x128xf32>
    %2 = tpu.matmul %0, %1, %cst {dimension_numbers = #tpu.dot_dimension_numbers<[1], [0], [0], [1], [0, 0, 1, 1], [], []>} : vector<32x576xbf16>, vector<576x128xbf16>, vector<32x128xf32> -> vector<32x128xf32>
    %c0_3 = arith.constant 0 : index
    %c0_4 = arith.constant 0 : index
    %3 = vector.load %arg3[%c0_3, %c0_4] : memref<1x128xf32, #tpu.memory_space<vmem>>, vector<1x128xf32>
    %4 = vector.broadcast %3 : vector<1x128xf32> to vector<32x128xf32>
    %5 = arith.addf %2, %4 : vector<32x128xf32>
    %cst_5 = arith.constant 0.000000e+00 : f32
    %6 = vector.broadcast %cst_5 : f32 to vector<32x128xf32>
    %7 = arith.maximumf %5, %6 : vector<32x128xf32>
    %8 = arith.truncf %7 : vector<32x128xf32> to vector<32x128xbf16>
    %c0_6 = arith.constant 0 : index
    %c0_7 = arith.constant 0 : index
    %9 = vector.load %arg4[%c0_6, %c0_7] : memref<32x128xbf16, #tpu.memory_space<vmem>>, vector<32x128xbf16>
    tpu.vector_store %arg4[%c0_6, %c0_7], %8 {strides = array<i32>} : memref<32x128xbf16, #tpu.memory_space<vmem>>, vector<32x128xbf16>,
    return
  }
  func.func @transform_0(%arg0: i32) -> (i32, i32) {
    %c0_i32 = arith.constant 0 : i32
    %c0_i32_0 = arith.constant 0 : i32
    return %arg0, %c0_i32 : i32, i32
  }
  func.func @transform_1(%arg0: i32) -> (i32, i32) {
    %c0_i32 = arith.constant 0 : i32
    %c0_i32_0 = arith.constant 0 : i32
    %c0_i32_1 = arith.constant 0 : i32
    return %c0_i32, %c0_i32_0 : i32, i32
  }
  func.func @transform_2(%arg0: i32) -> (i32, i32) {
    %c0_i32 = arith.constant 0 : i32
    %c0_i32_0 = arith.constant 0 : i32
    %c0_i32_1 = arith.constant 0 : i32
    return %c0_i32, %c0_i32_0 : i32, i32
  }
  func.func @transform_3(%arg0: i32) -> (i32, i32) {
    %c0_i32 = arith.constant 0 : i32
    %c0_i32_0 = arith.constant 0 : i32
    return %arg0, %c0_i32 : i32, i32
  }
}

module attributes {stable_mosaic.version = 11 : i64} {
  func.func @_conv_bn_relu_kernel(%arg0: i32, %arg1: memref<32x1152xbf16, #tpu.memory_space<vmem>>, %arg2: memref<1152x128xbf16, #tpu.memory_space<vmem>>, %arg3: memref<1x128xf32, #tpu.memory_space<vmem>>, %arg4: memref<32x128xbf16, #tpu.memory_space<vmem>>) attributes {dimension_semantics = [#tpu.dimension_semantics<parallel>], iteration_bounds = array<i64: 1>, scalar_prefetch = 0 : i64, scratch_operands = 0 : i64, tpu.core_type = #tpu.core_type<tc>, window_params = [{transform_indices = @transform_0, window_bounds = array<i64: 32, 1152>}, {pipeline_mode = #tpu.pipeline_mode<synchronous>, transform_indices = @transform_1, window_bounds = array<i64: 1152, 128>}, {pipeline_mode = #tpu.pipeline_mode<synchronous>, transform_indices = @transform_2, window_bounds = array<i64: 1, 128>}, {transform_indices = @transform_3, window_bounds = array<i64: 32, 128>}]} {
    %c0 = arith.constant 0 : index
    %c0_0 = arith.constant 0 : index
    %0 = vector.load %arg1[%c0, %c0_0] : memref<32x1152xbf16, #tpu.memory_space<vmem>>, vector<32x1152xbf16>
    %c0_1 = arith.constant 0 : index
    %c0_2 = arith.constant 0 : index
    %1 = vector.load %arg2[%c0_1, %c0_2] : memref<1152x128xbf16, #tpu.memory_space<vmem>>, vector<1152x128xbf16>
    %cst = arith.constant dense<0.000000e+00> : vector<32x128xf32>
    %2 = tpu.matmul %0, %1, %cst {dimension_numbers = #tpu.dot_dimension_numbers<[1], [0], [0], [1], [0, 0, 1, 1], [], []>} : vector<32x1152xbf16>, vector<1152x128xbf16>, vector<32x128xf32> -> vector<32x128xf32>
    %c0_3 = arith.constant 0 : index
    %c0_4 = arith.constant 0 : index
    %3 = vector.load %arg3[%c0_3, %c0_4] : memref<1x128xf32, #tpu.memory_space<vmem>>, vector<1x128xf32>
    %4 = vector.broadcast %3 : vector<1x128xf32> to vector<32x128xf32>
    %5 = arith.addf %2, %4 : vector<32x128xf32>
    %cst_5 = arith.constant 0.000000e+00 : f32
    %6 = vector.broadcast %cst_5 : f32 to vector<32x128xf32>
    %7 = arith.maximumf %5, %6 : vector<32x128xf32>
    %8 = arith.truncf %7 : vector<32x128xf32> to vector<32x128xbf16>
    %c0_6 = arith.constant 0 : index
    %c0_7 = arith.constant 0 : index
    %9 = vector.load %arg4[%c0_6, %c0_7] : memref<32x128xbf16, #tpu.memory_space<vmem>>, vector<32x128xbf16>
    tpu.vector_store %arg4[%c0_6, %c0_7], %8 {strides = array<i32>} : memref<32x128xbf16, #tpu.memory_space<vmem>>, vector<32x128xbf16>,
    return
  }
  func.func @transform_0(%arg0: i32) -> (i32, i32) {
    %c0_i32 = arith.constant 0 : i32
    %c0_i32_0 = arith.constant 0 : i32
    return %arg0, %c0_i32 : i32, i32
  }
  func.func @transform_1(%arg0: i32) -> (i32, i32) {
    %c0_i32 = arith.constant 0 : i32
    %c0_i32_0 = arith.constant 0 : i32
    %c0_i32_1 = arith.constant 0 : i32
    return %c0_i32, %c0_i32_0 : i32, i32
  }
  func.func @transform_2(%arg0: i32) -> (i32, i32) {
    %c0_i32 = arith.constant 0 : i32
    %c0_i32_0 = arith.constant 0 : i32
    %c0_i32_1 = arith.constant 0 : i32
    return %c0_i32, %c0_i32_0 : i32, i32
  }
  func.func @transform_3(%arg0: i32) -> (i32, i32) {
    %c0_i32 = arith.constant 0 : i32
    %c0_i32_0 = arith.constant 0 : i32
    return %arg0, %c0_i32 : i32, i32
  }
}

module attributes {stable_mosaic.version = 11 : i64} {
  func.func @_conv_bn_relu_kernel(%arg0: i32, %arg1: memref<32x1152xbf16, #tpu.memory_space<vmem>>, %arg2: memref<1152x128xbf16, #tpu.memory_space<vmem>>, %arg3: memref<1x128xf32, #tpu.memory_space<vmem>>, %arg4: memref<32x128xf32, #tpu.memory_space<vmem>>) attributes {dimension_semantics = [#tpu.dimension_semantics<parallel>], iteration_bounds = array<i64: 1>, scalar_prefetch = 0 : i64, scratch_operands = 0 : i64, tpu.core_type = #tpu.core_type<tc>, window_params = [{transform_indices = @transform_0, window_bounds = array<i64: 32, 1152>}, {pipeline_mode = #tpu.pipeline_mode<synchronous>, transform_indices = @transform_1, window_bounds = array<i64: 1152, 128>}, {pipeline_mode = #tpu.pipeline_mode<synchronous>, transform_indices = @transform_2, window_bounds = array<i64: 1, 128>}, {transform_indices = @transform_3, window_bounds = array<i64: 32, 128>}]} {
    %c0 = arith.constant 0 : index
    %c0_0 = arith.constant 0 : index
    %0 = vector.load %arg1[%c0, %c0_0] : memref<32x1152xbf16, #tpu.memory_space<vmem>>, vector<32x1152xbf16>
    %c0_1 = arith.constant 0 : index
    %c0_2 = arith.constant 0 : index
    %1 = vector.load %arg2[%c0_1, %c0_2] : memref<1152x128xbf16, #tpu.memory_space<vmem>>, vector<1152x128xbf16>
    %cst = arith.constant dense<0.000000e+00> : vector<32x128xf32>
    %2 = tpu.matmul %0, %1, %cst {dimension_numbers = #tpu.dot_dimension_numbers<[1], [0], [0], [1], [0, 0, 1, 1], [], []>} : vector<32x1152xbf16>, vector<1152x128xbf16>, vector<32x128xf32> -> vector<32x128xf32>
    %c0_3 = arith.constant 0 : index
    %c0_4 = arith.constant 0 : index
    %3 = vector.load %arg3[%c0_3, %c0_4] : memref<1x128xf32, #tpu.memory_space<vmem>>, vector<1x128xf32>
    %4 = vector.broadcast %3 : vector<1x128xf32> to vector<32x128xf32>
    %5 = arith.addf %2, %4 : vector<32x128xf32>
    %cst_5 = arith.constant 0.000000e+00 : f32
    %6 = vector.broadcast %cst_5 : f32 to vector<32x128xf32>
    %7 = arith.maximumf %5, %6 : vector<32x128xf32>
    %c0_6 = arith.constant 0 : index
    %c0_7 = arith.constant 0 : index
    %8 = vector.load %arg4[%c0_6, %c0_7] : memref<32x128xf32, #tpu.memory_space<vmem>>, vector<32x128xf32>
    tpu.vector_store %arg4[%c0_6, %c0_7], %7 {strides = array<i32>} : memref<32x128xf32, #tpu.memory_space<vmem>>, vector<32x128xf32>,
    return
  }
  func.func @transform_0(%arg0: i32) -> (i32, i32) {
    %c0_i32 = arith.constant 0 : i32
    %c0_i32_0 = arith.constant 0 : i32
    return %arg0, %c0_i32 : i32, i32
  }
  func.func @transform_1(%arg0: i32) -> (i32, i32) {
    %c0_i32 = arith.constant 0 : i32
    %c0_i32_0 = arith.constant 0 : i32
    %c0_i32_1 = arith.constant 0 : i32
    return %c0_i32, %c0_i32_0 : i32, i32
  }
  func.func @transform_2(%arg0: i32) -> (i32, i32) {
    %c0_i32 = arith.constant 0 : i32
    %c0_i32_0 = arith.constant 0 : i32
    %c0_i32_1 = arith.constant 0 : i32
    return %c0_i32, %c0_i32_0 : i32, i32
  }
  func.func @transform_3(%arg0: i32) -> (i32, i32) {
    %c0_i32 = arith.constant 0 : i32
    %c0_i32_0 = arith.constant 0 : i32
    return %arg0, %c0_i32 : i32, i32
  }
}

module attributes {stable_mosaic.version = 11 : i64} {
  func.func @_maxpool_kernel(%arg0: i32, %arg1: memref<4x2x2x2x128xf32, #tpu.memory_space<vmem>>, %arg2: memref<4x2x128xf32, #tpu.memory_space<vmem>>) attributes {dimension_semantics = [#tpu.dimension_semantics<parallel>], iteration_bounds = array<i64: 1>, scalar_prefetch = 0 : i64, scratch_operands = 0 : i64, tpu.core_type = #tpu.core_type<tc>, window_params = [{transform_indices = @transform_0, window_bounds = array<i64: 4, 2, 2, 2, 128>}, {transform_indices = @transform_1, window_bounds = array<i64: 4, 2, 128>}]} {
    %c0 = arith.constant 0 : index
    %c0_0 = arith.constant 0 : index
    %c0_1 = arith.constant 0 : index
    %c0_2 = arith.constant 0 : index
    %c0_3 = arith.constant 0 : index
    %0 = vector.load %arg1[%c0, %c0_0, %c0_1, %c0_2, %c0_3] : memref<4x2x2x2x128xf32, #tpu.memory_space<vmem>>, vector<4x2x2x2x128xf32>
    %1 = vector.extract_strided_slice %0 {offsets = [0, 0, 0, 0, 0], sizes = [4, 1, 2, 2, 128], strides = [1, 1, 1, 1, 1]} : vector<4x2x2x2x128xf32> to vector<4x1x2x2x128xf32>
    %2 = vector.shape_cast %1 : vector<4x1x2x2x128xf32> to vector<4x2x2x128xf32>
    %3 = vector.extract_strided_slice %0 {offsets = [0, 1, 0, 0, 0], sizes = [4, 1, 2, 2, 128], strides = [1, 1, 1, 1, 1]} : vector<4x2x2x2x128xf32> to vector<4x1x2x2x128xf32>
    %4 = vector.shape_cast %3 : vector<4x1x2x2x128xf32> to vector<4x2x2x128xf32>
    %5 = arith.maximumf %2, %4 : vector<4x2x2x128xf32>
    %cst = arith.constant dense<0xFF800000> : vector<4x2x128xf32>
    %6 = vector.multi_reduction <maximumf>, %5, %cst [2] : vector<4x2x2x128xf32> to vector<4x2x128xf32>
    %c0_4 = arith.constant 0 : index
    %c0_5 = arith.constant 0 : index
    %c0_6 = arith.constant 0 : index
    %7 = vector.load %arg2[%c0_4, %c0_5, %c0_6] : memref<4x2x128xf32, #tpu.memory_space<vmem>>, vector<4x2x128xf32>
    tpu.vector_store %arg2[%c0_4, %c0_5, %c0_6], %6 {strides = array<i32>} : memref<4x2x128xf32, #tpu.memory_space<vmem>>, vector<4x2x128xf32>,
    return
  }
  func.func @transform_0(%arg0: i32) -> (i32, i32, i32, i32, i32) {
    %c0_i32 = arith.constant 0 : i32
    %c0_i32_0 = arith.constant 0 : i32
    %c0_i32_1 = arith.constant 0 : i32
    %c0_i32_2 = arith.constant 0 : i32
    %c0_i32_3 = arith.constant 0 : i32
    return %arg0, %c0_i32, %c0_i32_0, %c0_i32_1, %c0_i32_2 : i32, i32, i32, i32, i32
  }
  func.func @transform_1(%arg0: i32) -> (i32, i32, i32) {
    %c0_i32 = arith.constant 0 : i32
    %c0_i32_0 = arith.constant 0 : i32
    %c0_i32_1 = arith.constant 0 : i32
    return %arg0, %c0_i32, %c0_i32_0 : i32, i32, i32
  }
}

</mosaic_0001>

<bundles_post_ra>
// kernel: high_resolution_branch.9
= control target key start
LH: loop header
LB: loop body
LE: loop exit
PB: predicated region body
PF: predicated region fallthrough
CT: control target
= control target key end

     0   :  { %vm139_vm0 = vcmask 1043456   ;;  %vm114_vm1 = vcmask 588800   ;;  %vm320_vm2 = vcmask 519168   ;;  %s611_s1 = inlined_call_operand.vmem [shape: bf16[72,64], index: 1, kind: input, shape index: {}]   ;;  %s612_s0 = inlined_call_operand.vmem [shape: bf16[128,72], index: 0, kind: input, shape index: {}]   ;;  %s613_s2 = inlined_call_operand.vmem [shape: f32[1,64], index: 2, kind: input, shape index: {}]   ;;  %s614_s3 = inlined_call_operand.vmem [shape: bf16[128,64], index: 3, kind: output, shape index: {}]  }
   0x1   :  { %v446_v0 = vld [vmem:[%s611_s1 + $0x20] ss:$0 sps:$4 sm:$0xff]   ;;  %v447_v1 = vld [vmem:[%s611_s1 + $0x18] sm:$0xff]   ;;  %v448_v3 = vld [vmem:[%s611_s1 + $0x10] sm:$0xff]  }
   0x2   :  { %444 = vmatprep.subr.msk.bf16.mxu0 %vm139_vm0, %v446_v0  ;;  %445 = vmatprep.subr.msk.bf16.mxu1 %vm139_vm0, %v446_v0  ;;  %v141_v2 = vsel %vm139_vm0, %v446_v0, 0  ;;  %v451_v4 = vld [vmem:[%s612_s0] sm:$0xff]   ;;  %v449_v6 = vld [vmem:[%s611_s1 + $0x8] sm:$0xff]   ;;  %v455_v10 = vld [vmem:[%s612_s0 + $0x10] sm:$0xff]  }
   0x3   :  { %409 = vmatpush3.bf16.msra.mxu0 %v141_v2  ;;  %439 = vmatpush3.bf16.msra.mxu1 %v141_v2  ;;  %v452_v5 = vld [vmem:[%s612_s0 + $0x20] sm:$0xff]   ;;  %v453_v8 = vld [vmem:[%s612_s0 + $0x8] sm:$0xff]   ;;  %v456_v11 = vld [vmem:[%s612_s0 + $0x30] sm:$0xff]  }
   0x4   :  { %410 = vmatprep.subr.bf16.mxu0 %v447_v1  ;;  %435 = vmatprep.subr.bf16.mxu1 %v447_v1  ;;  %v450_v7 = vld [vmem:[%s611_s1] sm:$0xff]   ;;  %v454_v9 = vld [vmem:[%s612_s0 + $0x28] sm:$0xff]   ;;  %v457_v12 = vld [vmem:[%s612_s0 + $0x18] sm:$0xff]  }
   0x5   :  { %418 = vmatprep.mubr.msk.bf16.mxu0 %vm114_vm1, %v451_v4  ;;  %426 = vmatprep.mubr.msk.bf16.mxu1 %vm114_vm1, %v452_v5  ;;  %v458_v13 = vld [vmem:[%s612_s0 + $0x38] sm:$0xff]   ;;  %v529_v14 = vld [vmem:[%s613_s2] ss:$0 sm:$0xff] }
   0x7   :  { %411 = vmatpush3.bf16.msra.mxu0 %v447_v1  ;;  %440 = vmatpush3.bf16.msra.mxu1 %v447_v1 }
   0x8   :  { %412 = vmatprep.subr.bf16.mxu0 %v448_v3  ;;  %436 = vmatprep.subr.bf16.mxu1 %v448_v3 }
   0xb   :  { %413 = vmatpush3.bf16.msra.mxu0 %v448_v3  ;;  %441 = vmatpush3.bf16.msra.mxu1 %v448_v3 }
   0xc   :  { %414 = vmatprep.subr.bf16.mxu0 %v449_v6  ;;  %437 = vmatprep.subr.bf16.mxu1 %v449_v6 }
   0xf   :  { %415 = vmatpush3.bf16.msra.mxu0 %v449_v6  ;;  %442 = vmatpush3.bf16.msra.mxu1 %v449_v6 }
  0x10   :  { %416 = vmatprep.subr.bf16.mxu0 %v450_v7  ;;  %438 = vmatprep.subr.bf16.mxu1 %v450_v7 }
  0x13   :  { %417 = vmatpush3.bf16.msra.mxu0 %v450_v7  ;;  %443 = vmatpush3.bf16.msra.mxu1 %v450_v7 }
  0x16   :  { %419 = vmatmul.mubr.msk.bf16.vlgmr.msra.gmra.mxu0 %vm114_vm1, %v453_v8  ;;  %427 = vmatmul.mubr.msk.bf16.vlgmr.msra.gmra.mxu1 %vm114_vm1, %v454_v9 }
  0x17   :  { %422 = vmatprep.mubr.msk.bf16.mxu0 %vm114_vm1, %v455_v10  ;;  %430 = vmatprep.mubr.msk.bf16.mxu1 %vm114_vm1, %v456_v11 }
  0x1e   :  { %423 = vmatmul.mubr.msk.bf16.gmra.mxu0 %vm114_vm1, %v457_v12  ;;  %431 = vmatmul.mubr.msk.bf16.gmra.mxu1 %vm114_vm1, %v458_v13 }
  0xd6   :  { %v420_v15 = vpop.f32.mrf.mxu0  ;;  %v428_v16 = vpop.f32.mrf.mxu1 }
  0xd7   :  { %v186_v17 = vadd.f32 %v420_v15, %v529_v14  ;;  %v218_v18 = vadd.f32 %v428_v16, %v529_v14 }
  0xd8   :  { %v177_v19 = vpop.f32.mrf.mxu0  ;;  %v209_v20 = vpop.f32.mrf.mxu1 }
  0xd9   :  { %v242_v21 = vmax.f32 %v186_v17, 0.0  ;;  %v250_v22 = vmax.f32 %v218_v18, 0.0  ;;  %v178_v23 = vadd.f32 %v529_v14, %v177_v19  ;;  %v210_v24 = vadd.f32 %v529_v14, %v209_v20 }
  0xda   :  { %v421_v25 = vpop.f32.mrf.mxu0  ;;  %v429_v26 = vpop.f32.mrf.mxu1 }
  0xdb   :  { %v381_v27 = vpack.c.bf16 %v242_v21, %v242_v21  ;;  %v389_v28 = vpack.c.bf16 %v250_v22, %v250_v22  ;;  %v240_v29 = vmax.f32 %v178_v23, 0.0  ;;  %v248_v30 = vmax.f32 %v210_v24, 0.0 }
  0xdc   :  { %v189_v31 = vadd.f32 %v421_v25, %v529_v14  ;;  %v221_v32 = vadd.f32 %v429_v26, %v529_v14  ;;  %v180_v33 = vpop.f32.mrf.mxu0  ;;  %v212_v34 = vpop.f32.mrf.mxu1 }
  0xdd   :  { %323 = vst.msk [vmem:[%s614_s3 + $0x8] sm:$0xf] %vm320_vm2, %v381_v27  ;;  %331 = vst.msk [vmem:[%s614_s3 + $0x28] sm:$0xf] %vm320_vm2, %v389_v28  ;;  %v379_v35 = vpack.c.bf16 %v240_v29, %v240_v29  ;;  %v387_v36 = vpack.c.bf16 %v248_v30, %v248_v30  ;;  %v181_v37 = vadd.f32 %v529_v14, %v180_v33 }
  0xde   :  { %v213_v38 = vadd.f32 %v529_v14, %v212_v34  ;;  %v243_v39 = vmax.f32 %v189_v31, 0.0  ;;  %v251_v40 = vmax.f32 %v221_v32, 0.0  ;;  %v424_v41 = vpop.f32.mrf.mxu0  ;;  %v432_v42 = vpop.f32.mrf.mxu1 }
  0xdf   :  { %321 = vst.msk [vmem:[%s614_s3] sm:$0xf] %vm320_vm2, %v379_v35  ;;  %329 = vst.msk [vmem:[%s614_s3 + $0x20] sm:$0xf] %vm320_vm2, %v387_v36  ;;  %v241_v43 = vmax.f32 %v181_v37, 0.0  ;;  %v202_v45 = vadd.f32 %v424_v41, %v529_v14  ;;  %v234_v46 = vadd.f32 %v432_v42, %v529_v14 }
  0xe0   :  { %v249_v44 = vmax.f32 %v213_v38, 0.0  ;;  %v382_v47 = vpack.c.bf16 %v243_v39, %v243_v39  ;;  %v390_v48 = vpack.c.bf16 %v251_v40, %v251_v40  ;;  %v193_v49 = vpop.f32.mrf.mxu0  ;;  %v225_v50 = vpop.f32.mrf.mxu1 }
  0xe1   :  { %v380_v51 = vpack.c.bf16 %v241_v43, %v241_v43  ;;  %v246_v53 = vmax.f32 %v202_v45, 0.0  ;;  %v254_v54 = vmax.f32 %v234_v46, 0.0  ;;  %v194_v55 = vadd.f32 %v529_v14, %v193_v49 }
  0xe2   :  { %v388_v52 = vpack.c.bf16 %v249_v44, %v249_v44  ;;  %324 = vst.msk [vmem:[%s614_s3 + $0xc] sm:$0xf] %vm320_vm2, %v382_v47  ;;  %332 = vst.msk [vmem:[%s614_s3 + $0x2c] sm:$0xf] %vm320_vm2, %v390_v48  ;;  %v226_v56 = vadd.f32 %v529_v14, %v225_v50  ;;  %v425_v57 = vpop.f32.mrf.mxu0  ;;  %v433_v58 = vpop.f32.mrf.mxu1 }
  0xe3   :  { %322 = vst.msk [vmem:[%s614_s3 + $0x4] sm:$0xf] %vm320_vm2, %v380_v51  ;;  %v385_v59 = vpack.c.bf16 %v246_v53, %v246_v53  ;;  %v393_v60 = vpack.c.bf16 %v254_v54, %v254_v54  ;;  %v205_v61 = vadd.f32 %v425_v57, %v529_v14  ;;  %v237_v62 = vadd.f32 %v433_v58, %v529_v14 }
  0xe4   :  { %330 = vst.msk [vmem:[%s614_s3 + $0x24] sm:$0xf] %vm320_vm2, %v388_v52  ;;  %v244_v63 = vmax.f32 %v194_v55, 0.0  ;;  %v252_v0 = vmax.f32 %v226_v56, 0.0  ;;  %v196_v1 = vpop.f32.mrf.mxu0  ;;  %v228_v2 = vpop.f32.mrf.mxu1 }
  0xe5   :  { %327 = vst.msk [vmem:[%s614_s3 + $0x18] sm:$0xf] %vm320_vm2, %v385_v59  ;;  %335 = vst.msk [vmem:[%s614_s3 + $0x38] sm:$0xf] %vm320_vm2, %v393_v60  ;;  %v247_v3 = vmax.f32 %v205_v61, 0.0  ;;  %v255_v4 = vmax.f32 %v237_v62, 0.0  ;;  %v197_v5 = vadd.f32 %v529_v14, %v196_v1  ;;  %v229_v6 = vadd.f32 %v529_v14, %v228_v2 }
  0xe6   :  { %v383_v7 = vpack.c.bf16 %v244_v63, %v244_v63  ;;  %v391_v8 = vpack.c.bf16 %v252_v0, %v252_v0 }
  0xe7   :  { %v386_v9 = vpack.c.bf16 %v247_v3, %v247_v3  ;;  %v394_v10 = vpack.c.bf16 %v255_v4, %v255_v4  ;;  %v245_v11 = vmax.f32 %v197_v5, 0.0  ;;  %v253_v12 = vmax.f32 %v229_v6, 0.0 }
  0xe8   :  { %325 = vst.msk [vmem:[%s614_s3 + $0x10] sm:$0xf] %vm320_vm2, %v383_v7  ;;  %333 = vst.msk [vmem:[%s614_s3 + $0x30] sm:$0xf] %vm320_vm2, %v391_v8 }
  0xe9   :  { %328 = vst.msk [vmem:[%s614_s3 + $0x1c] sm:$0xf] %vm320_vm2, %v386_v9  ;;  %336 = vst.msk [vmem:[%s614_s3 + $0x3c] sm:$0xf] %vm320_vm2, %v394_v10  ;;  %v384_v13 = vpack.c.bf16 %v245_v11, %v245_v11  ;;  %v392_v14 = vpack.c.bf16 %v253_v12, %v253_v12 }
  0xeb   :  { %326 = vst.msk [vmem:[%s614_s3 + $0x14] sm:$0xf] %vm320_vm2, %v384_v13  ;;  %334 = vst.msk [vmem:[%s614_s3 + $0x34] sm:$0xf] %vm320_vm2, %v392_v14 }

// kernel: high_resolution_branch.10
= control target key start
LH: loop header
LB: loop body
LE: loop exit
PB: predicated region body
PF: predicated region fallthrough
CT: control target
= control target key end

     0   :  { %vm558_vm0 = vcmask 523264   ;;  %vm954_vm1 = vcmask 519168   ;;  %s1775_s1 = inlined_call_operand.vmem [shape: bf16[576,64], index: 1, kind: input, shape index: {}]   ;;  %s1776_s0 = inlined_call_operand.vmem [shape: bf16[128,576], index: 0, kind: input, shape index: {}]   ;;  %s1777_s2 = inlined_call_operand.vmem [shape: f32[1,64], index: 2, kind: input, shape index: {}]   ;;  %s1778_s3 = inlined_call_operand.vmem [shape: bf16[128,64], index: 3, kind: output, shape index: {}]  }
   0x1   :  { %v1264_v0 = vld [vmem:[%s1775_s1 + $0x78] sm:$0xff]   ;;  %v1268_v4 = vld [vmem:[%s1775_s1 + $0x70] sm:$0xff]   ;;  %v1272_v8 = vld [vmem:[%s1775_s1 + $0x68] sm:$0xff]  }
   0x2   :  { %v1265_v1 = vld [vmem:[%s1775_s1 + $0xf8] sm:$0xff]   ;;  %1092 = vmatprep.subr.bf16.mxu0 %v1264_v0  ;;  %v1269_v5 = vld [vmem:[%s1775_s1 + $0xf0] sm:$0xff]   ;;  %v1273_v9 = vld [vmem:[%s1775_s1 + $0xe8] sm:$0xff]  }
   0x3   :  { %v1266_v2 = vld [vmem:[%s1775_s1 + $0x38] sm:$0xff]   ;;  %1156 = vmatprep.subr.bf16.mxu1 %v1265_v1  ;;  %v1270_v6 = vld [vmem:[%s1775_s1 + $0x30] sm:$0xff]   ;;  %v1274_v10 = vld [vmem:[%s1775_s1 + $0x28] sm:$0xff]  }
   0x4   :  { %v1267_v3 = vld [vmem:[%s1775_s1 + $0xb8] sm:$0xff]   ;;  %1093 = vmatpush3.bf16.msra.mxu0 %v1266_v2  ;;  %v1271_v7 = vld [vmem:[%s1775_s1 + $0xb0] sm:$0xff]   ;;  %v1275_v11 = vld [vmem:[%s1775_s1 + $0xa8] sm:$0xff]  }
   0x5   :  { %1157 = vmatpush3.bf16.msra.mxu1 %v1267_v3  ;;  %1094 = vmatprep.subr.bf16.mxu0 %v1268_v4  ;;  %v1276_v12 = vld [vmem:[%s1775_s1 + $0x60] sm:$0xff]   ;;  %v1280_v16 = vld [vmem:[%s1775_s1 + $0x58] sm:$0xff]   ;;  %v1284_v20 = vld [vmem:[%s1775_s1 + $0x50] sm:$0xff]  }
   0x6   :  { %1158 = vmatprep.subr.bf16.mxu1 %v1269_v5  ;;  %v1277_v13 = vld [vmem:[%s1775_s1 + $0xe0] sm:$0xff]   ;;  %v1281_v17 = vld [vmem:[%s1775_s1 + $0xd8] sm:$0xff]   ;;  %v1285_v21 = vld [vmem:[%s1775_s1 + $0xd0] sm:$0xff]  }
   0x7   :  { %v1278_v14 = vld [vmem:[%s1775_s1 + $0x20] sm:$0xff]   ;;  %v1282_v18 = vld [vmem:[%s1775_s1 + $0x18] sm:$0xff]   ;;  %v1286_v22 = vld [vmem:[%s1775_s1 + $0x10] sm:$0xff]  }
   0x8   :  { %1095 = vmatpush3.bf16.msra.mxu0 %v1270_v6  ;;  %v1279_v15 = vld [vmem:[%s1775_s1 + $0xa0] sm:$0xff]   ;;  %v1283_v19 = vld [vmem:[%s1775_s1 + $0x98] sm:$0xff]   ;;  %v1287_v23 = vld [vmem:[%s1775_s1 + $0x90] sm:$0xff]  }
   0x9   :  { %1159 = vmatpush3.bf16.msra.mxu1 %v1271_v7  ;;  %1096 = vmatprep.subr.bf16.mxu0 %v1272_v8  ;;  %v1288_v24 = vld [vmem:[%s1775_s1 + $0x48] sm:$0xff]   ;;  %v1292_v28 = vld [vmem:[%s1775_s1 + $0x40] sm:$0xff]   ;;  %v1302_v36 = vld [vmem:[%s1775_s1 + $0x118] sm:$0xff]  }
   0xa   :  { %1160 = vmatprep.subr.bf16.mxu1 %v1273_v9  ;;  %v1289_v25 = vld [vmem:[%s1775_s1 + $0xc8] sm:$0xff]   ;;  %v1293_v29 = vld [vmem:[%s1775_s1 + $0xc0] sm:$0xff]   ;;  %v1315_v42 = vld [vmem:[%s1775_s1 + $0x110] sm:$0xff]  }
   0xb   :  { %v1290_v26 = vld [vmem:[%s1775_s1 + $0x8] sm:$0xff]   ;;  %v1294_v30 = vld [vmem:[%s1775_s1] sm:$0xff]   ;;  %v1311_v43 = vld [vmem:[%s1776_s0 + $0x5c] ss:$20 sps:$4 sm:$0xff]  }
   0xc   :  { %1097 = vmatpush3.bf16.msra.mxu0 %v1274_v10  ;;  %v1291_v27 = vld [vmem:[%s1775_s1 + $0x88] sm:$0xff]   ;;  %v1295_v31 = vld [vmem:[%s1775_s1 + $0x80] sm:$0xff]   ;;  %v1316_v47 = vld [vmem:[%s1776_s0 + $0x7c] ss:$20 sps:$4 sm:$0xff]  }
   0xd   :  { %1161 = vmatpush3.bf16.msra.mxu1 %v1275_v11  ;;  %1098 = vmatprep.subr.bf16.mxu0 %v1276_v12  ;;  %v1296_v32 = vld [vmem:[%s1776_s0] ss:$20 sps:$4 sm:$0xff]   ;;  %v1298_v33 = vld [vmem:[%s1776_s0 + $0x4] ss:$20 sps:$4 sm:$0xff]   ;;  %v1299_v34 = vld [vmem:[%s1776_s0 + $0x8] ss:$20 sps:$4 sm:$0xff]  }
   0xe   :  { %1162 = vmatprep.subr.bf16.mxu1 %v1277_v13  ;;  %v1301_v35 = vld [vmem:[%s1776_s0 + $0xc] ss:$20 sps:$4 sm:$0xff]   ;;  %615 = vmatprep.mubr.bf16.mxu0 %v1298_v33  ;;  %v1305_v38 = vld [vmem:[%s1776_s0 + $0x34] ss:$20 sps:$4 sm:$0xff]   ;;  %v1308_v40 = vld [vmem:[%s1776_s0 + $0x30] ss:$20 sps:$4 sm:$0xff]  }
   0xf   :  { %712 = vmatprep.mubr.bf16.mxu1 %v1301_v35  ;;  %v1303_v37 = vld [vmem:[%s1776_s0 + $0x2c] ss:$20 sps:$4 sm:$0xff]   ;;  %v1307_v39 = vld [vmem:[%s1776_s0 + $0x28] ss:$20 sps:$4 sm:$0xff]   ;;  %v1313_v44 = vld [vmem:[%s1776_s0 + $0x50] ss:$20 sps:$4 sm:$0xff]  }
  0x10   :  { %1099 = vmatpush3.bf16.msra.mxu0 %v1278_v14  ;;  %v1309_v41 = vld [vmem:[%s1776_s0 + $0x54] ss:$20 sps:$4 sm:$0xff]   ;;  %v1314_v45 = vld [vmem:[%s1776_s0 + $0x58] ss:$20 sps:$4 sm:$0xff]   ;;  %v1341_v49 = vld [vmem:[%s1775_s1 + $0x100] sm:$0xff]  }
  0x11   :  { %1163 = vmatpush3.bf16.msra.mxu1 %v1279_v15  ;;  %1100 = vmatprep.subr.bf16.mxu0 %v1280_v16  ;;  %v1328_v46 = vld [vmem:[%s1775_s1 + $0x108] sm:$0xff]   ;;  %v1318_v48 = vld [vmem:[%s1776_s0 + $0x84] ss:$20 sps:$4 sm:$0xff]   ;;  %v1321_v51 = vld [vmem:[%s1776_s0 + $0x80] ss:$20 sps:$4 sm:$0xff]  }
  0x12   :  { %1164 = vmatprep.subr.bf16.mxu1 %v1281_v17  ;;  %v1320_v50 = vld [vmem:[%s1776_s0 + $0x78] ss:$20 sps:$4 sm:$0xff]   ;;  %v1326_v54 = vld [vmem:[%s1776_s0 + $0xa0] ss:$20 sps:$4 sm:$0xff]   ;;  %v1327_v55 = vld [vmem:[%s1776_s0 + $0xa8] ss:$20 sps:$4 sm:$0xff]  }
  0x13   :  { %v1322_v52 = vld [vmem:[%s1776_s0 + $0xa4] ss:$20 sps:$4 sm:$0xff]   ;;  %v1324_v53 = vld [vmem:[%s1776_s0 + $0xac] ss:$20 sps:$4 sm:$0xff]   ;;  %v1331_v57 = vld [vmem:[%s1776_s0 + $0xd4] ss:$20 sps:$4 sm:$0xff]  }
  0x14   :  { %1101 = vmatpush3.bf16.msra.mxu0 %v1282_v18  ;;  %v1329_v56 = vld [vmem:[%s1776_s0 + $0xcc] ss:$20 sps:$4 sm:$0xff]   ;;  %v1333_v58 = vld [vmem:[%s1776_s0 + $0xc8] ss:$20 sps:$4 sm:$0xff]   ;;  %v1334_v59 = vld [vmem:[%s1776_s0 + $0xd0] ss:$20 sps:$4 sm:$0xff]  }
  0x15   :  { %1165 = vmatpush3.bf16.msra.mxu1 %v1283_v19  ;;  %1102 = vmatprep.subr.bf16.mxu0 %v1284_v20  ;;  %v1335_v60 = vld [vmem:[%s1776_s0 + $0xf4] ss:$20 sps:$4 sm:$0xff]   ;;  %v1337_v61 = vld [vmem:[%s1776_s0 + $0xfc] ss:$20 sps:$4 sm:$0xff]   ;;  %v1340_v63 = vld [vmem:[%s1776_s0 + $0xf8] ss:$20 sps:$4 sm:$0xff]  }
  0x16   :  { %1166 = vmatprep.subr.bf16.mxu1 %v1285_v21  ;;  %v1339_v62 = vld [vmem:[%s1776_s0 + $0xf0] ss:$20 sps:$4 sm:$0xff]   ;;  %v1346_v2 = vld [vmem:[%s1776_s0 + $0x118] ss:$20 sps:$4 sm:$0xff]   ;;  %v1347_v3 = vld [vmem:[%s1776_s0 + $0x120] ss:$20 sps:$4 sm:$0xff]  }
  0x17   :  { %v1342_v0 = vld [vmem:[%s1776_s0 + $0x11c] ss:$20 sps:$4 sm:$0xff]   ;;  %v1344_v1 = vld [vmem:[%s1776_s0 + $0x124] ss:$20 sps:$4 sm:$0xff]   ;;  %v1352_v8 = vld [vmem:[%s1776_s0 + $0x60] ss:$20 sps:$4 sm:$0xff]  }
  0x18   :  { %1103 = vmatpush3.bf16.msra.mxu0 %v1286_v22  ;;  %v1348_v4 = vld [vmem:[%s1776_s0 + $0x10] ss:$20 sps:$4 sm:$0xff]   ;;  %v1350_v6 = vld [vmem:[%s1776_s0 + $0x38] ss:$20 sps:$4 sm:$0xff]   ;;  %v1353_v9 = vld [vmem:[%s1776_s0 + $0x100] ss:$20 sps:$4 sm:$0xff]  }
  0x19   :  { %1167 = vmatpush3.bf16.msra.mxu1 %v1287_v23  ;;  %1104 = vmatprep.subr.bf16.mxu0 %v1288_v24  ;;  %v1349_v5 = vld [vmem:[%s1776_s0 + $0xb0] ss:$20 sps:$4 sm:$0xff]   ;;  %v1351_v7 = vld [vmem:[%s1776_s0 + $0xd8] ss:$20 sps:$4 sm:$0xff]   ;;  %v1354_v10 = vld [vmem:[%s1776_s0 + $0x88] ss:$20 sps:$4 sm:$0xff]  }
  0x1a   :  { %1168 = vmatprep.subr.bf16.mxu1 %v1289_v25  ;;  %v1355_v11 = vld [vmem:[%s1776_s0 + $0x128] ss:$20 sps:$4 sm:$0xff]  }
  0x1c   :  { %1105 = vmatpush3.bf16.msra.mxu0 %v1290_v26 }
  0x1d   :  { %1169 = vmatpush3.bf16.msra.mxu1 %v1291_v27  ;;  %1106 = vmatprep.subr.bf16.mxu0 %v1292_v28 }
  0x1e   :  { %1170 = vmatprep.subr.bf16.mxu1 %v1293_v29 }
  0x20   :  { %1107 = vmatpush3.bf16.msra.mxu0 %v1294_v30 }
  0x21   :  { %1171 = vmatpush3.bf16.msra.mxu1 %v1295_v31  ;;  %1232 = vmatprep.subr.bf16.mxu0 %v1302_v36 }
  0x22   :  { %1256 = vmatprep.subr.bf16.mxu1 %v1302_v36 }
  0x23   :  { %616 = vmatmul.mubr.bf16.vlgmr.msra.gmra.mxu0 %v1296_v32 }
  0x24   :  { %713 = vmatmul.mubr.bf16.vlgmr.msra.gmra.mxu1 %v1299_v34  ;;  %1233 = vmatpush3.bf16.msra.mxu0 %v1302_v36 }
  0x25   :  { %1260 = vmatpush3.bf16.msra.mxu1 %v1302_v36  ;;  %623 = vmatprep.mubr.bf16.mxu0 %v1303_v37 }
  0x26   :  { %720 = vmatprep.mubr.bf16.mxu1 %v1305_v38  ;;  %1234 = vmatprep.subr.bf16.mxu0 %v1315_v42 }
  0x27   :  { %1257 = vmatprep.subr.bf16.mxu1 %v1315_v42 }
  0x28   :  { %1235 = vmatpush3.bf16.msra.mxu0 %v1315_v42 }
  0x29   :  { %1261 = vmatpush3.bf16.msra.mxu1 %v1315_v42  ;;  %1236 = vmatprep.subr.bf16.mxu0 %v1328_v46 }
  0x2a   :  { %1258 = vmatprep.subr.bf16.mxu1 %v1328_v46 }
  0x2b   :  { %624 = vmatmul.mubr.bf16.gmra.mxu0 %v1307_v39 }
  0x2c   :  { %721 = vmatmul.mubr.bf16.gmra.mxu1 %v1308_v40  ;;  %631 = vmatprep.mubr.bf16.mxu0 %v1309_v41 }
  0x2d   :  { %728 = vmatprep.mubr.bf16.mxu1 %v1311_v43  ;;  %1237 = vmatpush3.bf16.msra.mxu0 %v1328_v46 }
  0x2e   :  { %1262 = vmatpush3.bf16.msra.mxu1 %v1328_v46  ;;  %1238 = vmatprep.subr.bf16.mxu0 %v1341_v49 }
  0x2f   :  { %1259 = vmatprep.subr.bf16.mxu1 %v1341_v49 }
  0x31   :  { %1239 = vmatpush3.bf16.msra.mxu0 %v1341_v49 }
  0x32   :  { %1263 = vmatpush3.bf16.msra.mxu1 %v1341_v49 }
  0x33   :  { %632 = vmatmul.mubr.bf16.gmra.mxu0 %v1313_v44 }
  0x34   :  { %729 = vmatmul.mubr.bf16.gmra.mxu1 %v1314_v45  ;;  %639 = vmatprep.mubr.bf16.mxu0 %v1316_v47 }
  0x35   :  { %736 = vmatprep.mubr.bf16.mxu1 %v1318_v48 }
  0x3b   :  { %640 = vmatmul.mubr.bf16.gmra.mxu0 %v1320_v50 }
  0x3c   :  { %737 = vmatmul.mubr.bf16.gmra.mxu1 %v1321_v51  ;;  %647 = vmatprep.mubr.bf16.mxu0 %v1322_v52 }
  0x3d   :  { %744 = vmatprep.mubr.bf16.mxu1 %v1324_v53 }
  0x43   :  { %648 = vmatmul.mubr.bf16.gmra.mxu0 %v1326_v54 }
  0x44   :  { %745 = vmatmul.mubr.bf16.gmra.mxu1 %v1327_v55  ;;  %655 = vmatprep.mubr.bf16.mxu0 %v1329_v56 }
  0x45   :  { %752 = vmatprep.mubr.bf16.mxu1 %v1331_v57 }
  0x4b   :  { %656 = vmatmul.mubr.bf16.gmra.mxu0 %v1333_v58 }
  0x4c   :  { %753 = vmatmul.mubr.bf16.gmra.mxu1 %v1334_v59  ;;  %663 = vmatprep.mubr.bf16.mxu0 %v1335_v60 }
  0x4d   :  { %760 = vmatprep.mubr.bf16.mxu1 %v1337_v61 }
  0x53   :  { %664 = vmatmul.mubr.bf16.gmra.mxu0 %v1339_v62 }
  0x54   :  { %761 = vmatmul.mubr.bf16.gmra.mxu1 %v1340_v63  ;;  %671 = vmatprep.mubr.bf16.mxu0 %v1342_v0 }
  0x55   :  { %768 = vmatprep.mubr.bf16.mxu1 %v1344_v1 }
  0x5b   :  { %672 = vmatmul.mubr.bf16.gmra.mxu0 %v1346_v2 }
  0x5c   :  { %769 = vmatmul.mubr.bf16.gmra.mxu1 %v1347_v3  ;;  %1240 = vmatprep.mubr.msk.bf16.mxu0 %vm558_vm0, %v1348_v4  ;;  %v1649_v3 = vld [vmem:[%s1777_s2] ss:$0 sm:$0xff] }
  0x5d   :  { %1248 = vmatprep.mubr.msk.bf16.mxu1 %vm558_vm0, %v1349_v5 }
  0x63   :  { %1241 = vmatmul.mubr.msk.bf16.vlgmr.msra.gmra.mxu0 %vm558_vm0, %v1350_v6 }
  0x64   :  { %1249 = vmatmul.mubr.msk.bf16.vlgmr.msra.gmra.mxu1 %vm558_vm0, %v1351_v7  ;;  %1244 = vmatprep.mubr.msk.bf16.mxu0 %vm558_vm0, %v1352_v8 }
  0x65   :  { %1252 = vmatprep.mubr.msk.bf16.mxu1 %vm558_vm0, %v1353_v9 }
  0x6b   :  { %1245 = vmatmul.mubr.msk.bf16.gmra.mxu0 %vm558_vm0, %v1354_v10 }
  0x6c   :  { %1253 = vmatmul.mubr.msk.bf16.gmra.mxu1 %vm558_vm0, %v1355_v11 }
  0xe3   :  { %v1108_v12 = vpop.f32.mrf.mxu0 }
  0xe4   :  { %v1172_v13 = vpop.f32.mrf.mxu1 }
  0xe5   :  { %v1109_v14 = vpop.f32.mrf.mxu0 }
  0xe6   :  { %v1173_v15 = vpop.f32.mrf.mxu1  ;;  %v1110_v63 = vadd.f32 %v1109_v14, %v1108_v12 }
  0xe7   :  { %v1111_v16 = vpop.f32.mrf.mxu0  ;;  %v1174_v10 = vadd.f32 %v1173_v15, %v1172_v13 }
  0xe8   :  { %v1175_v17 = vpop.f32.mrf.mxu1  ;;  %v618_v9 = vadd.f32 %v1110_v63, %v1649_v3 }
  0xe9   :  { %v1112_v18 = vpop.f32.mrf.mxu0 }
  0xea   :  { %v1176_v19 = vpop.f32.mrf.mxu1  ;;  %v1113_v0 = vadd.f32 %v1112_v18, %v1111_v16 }
  0xeb   :  { %v1114_v20 = vpop.f32.mrf.mxu0  ;;  %v1177_v16 = vadd.f32 %v1176_v19, %v1175_v17  ;;  %v715_v19 = vadd.f32 %v1174_v10, %v618_v9 }
  0xec   :  { %v1612_v21 = vpop.f32.mrf.mxu1  ;;  %v621_v11 = vadd.f32 %v1113_v0, %v1649_v3 }
  0xed   :  { %v1115_v22 = vpop.f32.mrf.mxu0 }
  0xee   :  { %v1179_v23 = vpop.f32.mrf.mxu1  ;;  %v1116_v1 = vadd.f32 %v1115_v22, %v1114_v20 }
  0xef   :  { %v1117_v24 = vpop.f32.mrf.mxu0 }
  0xf0   :  { %v1614_v25 = vpop.f32.mrf.mxu1  ;;  %v626_v12 = vadd.f32 %v1116_v1, %v1649_v3 }
  0xf1   :  { %v1118_v26 = vpop.f32.mrf.mxu0 }
  0xf2   :  { %v1182_v27 = vpop.f32.mrf.mxu1  ;;  %v1119_v4 = vadd.f32 %v1118_v26, %v1117_v24  ;;  %v1180_v26 = vadd.f32 %v1179_v23, %v1612_v21 }
  0xf3   :  { %v1120_v28 = vpop.f32.mrf.mxu0  ;;  %v1183_v13 = vadd.f32 %v1182_v27, %v1614_v25 }
  0xf4   :  { %v1184_v29 = vpop.f32.mrf.mxu1  ;;  %v629_v18 = vadd.f32 %v1119_v4, %v1649_v3  ;;  %v723_v17 = vadd.f32 %v1180_v26, %v626_v12  ;;  %v718_v4 = vadd.f32 %v1177_v16, %v621_v11 }
  0xf5   :  { %v1121_v30 = vpop.f32.mrf.mxu0 }
  0xf6   :  { %v1185_v31 = vpop.f32.mrf.mxu1  ;;  %v1122_v5 = vadd.f32 %v1121_v30, %v1120_v28  ;;  %v726_v23 = vadd.f32 %v1183_v13, %v629_v18 }
  0xf7   :  { %v1616_v32 = vpop.f32.mrf.mxu0  ;;  %v1186_v15 = vadd.f32 %v1185_v31, %v1184_v29 }
  0xf8   :  { %v1618_v33 = vpop.f32.mrf.mxu1  ;;  %v634_v20 = vadd.f32 %v1122_v5, %v1649_v3 }
  0xf9   :  { %v1620_v34 = vpop.f32.mrf.mxu0 }
  0xfa   :  { %v1622_v35 = vpop.f32.mrf.mxu1 }
  0xfb   :  { %v1126_v36 = vpop.f32.mrf.mxu0  ;;  %v1673_v25 = vadd.f32 %v1622_v35, %v1618_v33 }
  0xfc   :  { %v1624_v37 = vpop.f32.mrf.mxu1 }
  0xfd   :  { %v1127_v38 = vpop.f32.mrf.mxu0 }
  0xfe   :  { %v1626_v39 = vpop.f32.mrf.mxu1  ;;  %v1128_v28 = vadd.f32 %v1127_v38, %v1126_v36  ;;  %v1669_v36 = vadd.f32 %v1186_v15, %v634_v20 }
  0xff   :  { %v1129_v40 = vpop.f32.mrf.mxu0 }
 0x100   :  { %v1628_v41 = vpop.f32.mrf.mxu1  ;;  %v642_v27 = vadd.f32 %v1128_v28, %v1649_v3 }
 0x101   :  { %v1130_v42 = vpop.f32.mrf.mxu0 }
 0x102   :  { %v1630_v43 = vpop.f32.mrf.mxu1  ;;  %v1131_v30 = vadd.f32 %v1130_v42, %v1129_v40 }
 0x103   :  { %v1132_v44 = vpop.f32.mrf.mxu0  ;;  %v1195_v33 = vadd.f32 %v1630_v43, %v1628_v41 }
 0x104   :  { %v1632_v45 = vpop.f32.mrf.mxu1  ;;  %v645_v29 = vadd.f32 %v1131_v30, %v1649_v3 }
 0x105   :  { %v1133_v46 = vpop.f32.mrf.mxu0 }
 0x106   :  { %v1634_v47 = vpop.f32.mrf.mxu1  ;;  %v1694_v41 = vadd.f32 %v1195_v33, %v645_v29 }
 0x107   :  { %v1135_v48 = vpop.f32.mrf.mxu0  ;;  %v1198_v35 = vadd.f32 %v1634_v47, %v1632_v45 }
 0x108   :  { %v1636_v49 = vpop.f32.mrf.mxu1 }
 0x109   :  { %v1136_v50 = vpop.f32.mrf.mxu0 }
 0x10a   :  { %v1638_v51 = vpop.f32.mrf.mxu1  ;;  %v1137_v0 = vadd.f32 %v1136_v50, %v1135_v48 }
 0x10b   :  { %v1138_v52 = vpop.f32.mrf.mxu0 }
 0x10c   :  { %v1202_v53 = vpop.f32.mrf.mxu1 }
 0x10d   :  { %v1139_v54 = vpop.f32.mrf.mxu0 }
 0x10e   :  { %v1203_v55 = vpop.f32.mrf.mxu1  ;;  %v1140_v22 = vadd.f32 %v1139_v54, %v1138_v52  ;;  %v1125_v52 = vadd.f32 %v1620_v34, %v1616_v32  ;;  %v653_v32 = vadd.f32 %v1137_v0, %v1649_v3 }
 0x10f   :  { %v1141_v56 = vpop.f32.mrf.mxu0  ;;  %v1204_v34 = vadd.f32 %v1203_v55, %v1202_v53  ;;  %v1201_v53 = vadd.f32 %v1638_v51, %v1636_v49 }
 0x110   :  { %v1640_v57 = vpop.f32.mrf.mxu1  ;;  %v658_v54 = vadd.f32 %v1140_v22, %v1649_v3 }
 0x111   :  { %v1142_v58 = vpop.f32.mrf.mxu0 }
 0x112   :  { %v1206_v59 = vpop.f32.mrf.mxu1  ;;  %v1143_v1 = vadd.f32 %v1142_v58, %v1141_v56  ;;  %v1689_v56 = vadd.f32 %v1125_v52, %v1649_v3 }
 0x113   :  { %v1144_v60 = vpop.f32.mrf.mxu0  ;;  %v1207_v55 = vadd.f32 %v1206_v59, %v1640_v57 }
 0x114   :  { %v1642_v61 = vpop.f32.mrf.mxu1  ;;  %v661_v40 = vadd.f32 %v1143_v1, %v1649_v3 }
 0x115   :  { %v1145_v62 = vpop.f32.mrf.mxu0 }
 0x116   :  { %v1644_v2 = vpop.f32.mrf.mxu1  ;;  %v1146_v42 = vadd.f32 %v1145_v62, %v1144_v60  ;;  %v755_v60 = vadd.f32 %v1204_v34, %v658_v54 }
 0x117   :  { %v1651_v6 = vpop.f32.mrf.mxu0  ;;  %v1210_v9 = vadd.f32 %v1644_v2, %v1642_v61 }
 0x118   :  { %v1653_v7 = vpop.f32.mrf.mxu1  ;;  %v666_v43 = vadd.f32 %v1146_v42, %v1649_v3 }
 0x119   :  { %1779 = vst [vmem:[#allocation2_spill] sm:$0xff] %v1653_v7  ;;  %v1655_v8 = vpop.f32.mrf.mxu0  ;;  %v1134_v7 = vadd.f32 %v1133_v46, %v1132_v44  ;;  %v1192_v46 = vadd.f32 %v1626_v39, %v1624_v37 }
 0x11a   :  { %1780 = vst [vmem:[#allocation3_spill] sm:$0xff] %v1655_v8  ;;  %v1660_v14 = vpop.f32.mrf.mxu1  ;;  %v763_v0 = vadd.f32 %v1210_v9, %v666_v43 }
 0x11b   :  { %1781 = vst [vmem:[#allocation4_spill] sm:$0xff] %v1660_v14  ;;  %v1150_v24 = vpop.f32.mrf.mxu0  ;;  %v650_v31 = vadd.f32 %v1134_v7, %v1649_v3  ;;  %v739_v5 = vadd.f32 %v1192_v46, %v642_v27  ;;  %v758_v7 = vadd.f32 %v1207_v55, %v661_v40 }
 0x11c   :  { %v1214_v63 = vpop.f32.mrf.mxu1 }
 0x11d   :  { %v1151_v8 = vpop.f32.mrf.mxu0  ;;  %v747_v39 = vadd.f32 %v1198_v35, %v650_v31 }
 0x11e   :  { %v1215_v14 = vpop.f32.mrf.mxu1  ;;  %v1152_v48 = vadd.f32 %v1151_v8, %v1150_v24  ;;  %v750_v8 = vadd.f32 %v1201_v53, %v653_v32 }
 0x11f   :  { %v1153_v21 = vpop.f32.mrf.mxu0  ;;  %v1216_v22 = vadd.f32 %v1215_v14, %v1214_v63 }
 0x120   :  { %v1678_v38 = vpop.f32.mrf.mxu1  ;;  %v674_v49 = vadd.f32 %v1152_v48, %v1649_v3  ;;  %v1783_v46 = vld [vmem:[#allocation2_spill] sm:$0xff] }
 0x121   :  { %v1154_v44 = vpop.f32.mrf.mxu0  ;;  %v1782_v10 = vld [vmem:[#allocation3_spill] sm:$0xff] }
 0x122   :  { %v1218_v50 = vpop.f32.mrf.mxu1  ;;  %v1149_v11 = vadd.f32 %v1782_v10, %v1651_v6  ;;  %v1155_v12 = vadd.f32 %v1154_v44, %v1153_v21  ;;  %v771_v52 = vadd.f32 %v1216_v22, %v674_v49  ;;  %v1784_v33 = vld [vmem:[#allocation4_spill] sm:$0xff] }
 0x123   :  { %v1242_v58 = vpop.f32.mrf.mxu0  ;;  %v1219_v34 = vadd.f32 %v1218_v50, %v1678_v38  ;;  %v1213_v35 = vadd.f32 %v1784_v33, %v1783_v46 }
 0x124   :  { %v820_v62 = vadd.f32 %v1242_v58, %v723_v17  ;;  %v1250_v37 = vpop.f32.mrf.mxu1  ;;  %v677_v14 = vadd.f32 %v1155_v12, %v1649_v3  ;;  %v669_v27 = vadd.f32 %v1149_v11, %v1649_v3 }
 0x125   :  { %v852_v45 = vadd.f32 %v1250_v37, %v755_v60  ;;  %v811_v47 = vpop.f32.mrf.mxu0 }
 0x126   :  { %v876_v51 = vmax.f32 %v820_v62, 0.0  ;;  %v812_v57 = vadd.f32 %v811_v47, %v715_v19  ;;  %v843_v59 = vpop.f32.mrf.mxu1  ;;  %v774_v37 = vadd.f32 %v1219_v34, %v677_v14  ;;  %v766_v49 = vadd.f32 %v1213_v35, %v669_v27 }
 0x127   :  { %v884_v16 = vmax.f32 %v852_v45, 0.0  ;;  %v844_v18 = vadd.f32 %v843_v59, %v747_v39  ;;  %v1243_v20 = vpop.f32.mrf.mxu0  ;;  %v734_v45 = vadd.f32 %v1673_v25, %v1689_v56 }
 0x128   :  { %v1078_v24 = vpack.c.bf16 %v876_v51, %v876_v51  ;;  %v874_v26 = vmax.f32 %v812_v57, 0.0  ;;  %v823_v28 = vadd.f32 %v1243_v20, %v726_v23  ;;  %v1251_v30 = vpop.f32.mrf.mxu1 }
 0x129   :  { %v1086_v13 = vpack.c.bf16 %v884_v16, %v884_v16  ;;  %v882_v15 = vmax.f32 %v844_v18, 0.0  ;;  %v855_v61 = vadd.f32 %v1251_v30, %v758_v7  ;;  %v814_v2 = vpop.f32.mrf.mxu0 }
 0x12a   :  { %957 = vst.msk [vmem:[%s1778_s3 + $0x8] sm:$0xf] %vm954_vm1, %v1078_v24  ;;  %v1076_v6 = vpack.c.bf16 %v874_v26, %v874_v26  ;;  %v877_v1 = vmax.f32 %v823_v28, 0.0  ;;  %v815_v17 = vadd.f32 %v814_v2, %v718_v4  ;;  %v846_v19 = vpop.f32.mrf.mxu1 }
 0x12b   :  { %965 = vst.msk [vmem:[%s1778_s3 + $0x28] sm:$0xf] %vm954_vm1, %v1086_v13  ;;  %v1084_v63 = vpack.c.bf16 %v882_v15, %v882_v15  ;;  %v885_v54 = vmax.f32 %v855_v61, 0.0  ;;  %v847_v21 = vadd.f32 %v846_v19, %v750_v8  ;;  %v1246_v23 = vpop.f32.mrf.mxu0 }
 0x12c   :  { %955 = vst.msk [vmem:[%s1778_s3] sm:$0xf] %vm954_vm1, %v1076_v6  ;;  %v1079_v4 = vpack.c.bf16 %v877_v1, %v877_v1  ;;  %v875_v29 = vmax.f32 %v815_v17, 0.0  ;;  %v836_v31 = vadd.f32 %v1246_v23, %v739_v5  ;;  %v1254_v32 = vpop.f32.mrf.mxu1 }
 0x12d   :  { %963 = vst.msk [vmem:[%s1778_s3 + $0x20] sm:$0xf] %vm954_vm1, %v1084_v63  ;;  %v1087_v40 = vpack.c.bf16 %v885_v54, %v885_v54  ;;  %v883_v42 = vmax.f32 %v847_v21, 0.0  ;;  %v868_v44 = vadd.f32 %v1254_v32, %v771_v52  ;;  %v827_v3 = vpop.f32.mrf.mxu0 }
 0x12e   :  { %958 = vst.msk [vmem:[%s1778_s3 + $0xc] sm:$0xf] %vm954_vm1, %v1079_v4  ;;  %v1077_v48 = vpack.c.bf16 %v875_v29, %v875_v29  ;;  %v880_v53 = vmax.f32 %v836_v31, 0.0  ;;  %v828_v38 = vadd.f32 %v827_v3, %v1669_v36  ;;  %v859_v50 = vpop.f32.mrf.mxu1 }
 0x12f   :  { %966 = vst.msk [vmem:[%s1778_s3 + $0x2c] sm:$0xf] %vm954_vm1, %v1087_v40  ;;  %v1085_v55 = vpack.c.bf16 %v883_v42, %v883_v42  ;;  %v888_v58 = vmax.f32 %v868_v44, 0.0  ;;  %v860_v60 = vadd.f32 %v859_v50, %v763_v0  ;;  %v1247_v62 = vpop.f32.mrf.mxu0 }
 0x130   :  { %956 = vst.msk [vmem:[%s1778_s3 + $0x4] sm:$0xf] %vm954_vm1, %v1077_v48  ;;  %v1082_v39 = vpack.c.bf16 %v880_v53, %v880_v53  ;;  %v878_v5 = vmax.f32 %v828_v38, 0.0  ;;  %v839_v36 = vadd.f32 %v1247_v62, %v1694_v41  ;;  %v1255_v43 = vpop.f32.mrf.mxu1 }
 0x131   :  { %964 = vst.msk [vmem:[%s1778_s3 + $0x24] sm:$0xf] %vm954_vm1, %v1085_v55  ;;  %v1090_v47 = vpack.c.bf16 %v888_v58, %v888_v58  ;;  %v886_v7 = vmax.f32 %v860_v60, 0.0  ;;  %v871_v8 = vadd.f32 %v1255_v43, %v774_v37  ;;  %v830_v9 = vpop.f32.mrf.mxu0 }
 0x132   :  { %961 = vst.msk [vmem:[%s1778_s3 + $0x18] sm:$0xf] %vm954_vm1, %v1082_v39  ;;  %v1080_v41 = vpack.c.bf16 %v878_v5, %v878_v5  ;;  %v881_v51 = vmax.f32 %v839_v36, 0.0  ;;  %v831_v57 = vadd.f32 %v830_v9, %v734_v45  ;;  %v862_v59 = vpop.f32.mrf.mxu1 }
 0x133   :  { %969 = vst.msk [vmem:[%s1778_s3 + $0x38] sm:$0xf] %vm954_vm1, %v1090_v47  ;;  %v1088_v25 = vpack.c.bf16 %v886_v7, %v886_v7  ;;  %v889_v56 = vmax.f32 %v871_v8, 0.0  ;;  %v863_v10 = vadd.f32 %v862_v59, %v766_v49 }
 0x134   :  { %959 = vst.msk [vmem:[%s1778_s3 + $0x10] sm:$0xf] %vm954_vm1, %v1080_v41  ;;  %v1083_v11 = vpack.c.bf16 %v881_v51, %v881_v51  ;;  %v879_v12 = vmax.f32 %v831_v57, 0.0 }
 0x135   :  { %967 = vst.msk [vmem:[%s1778_s3 + $0x30] sm:$0xf] %vm954_vm1, %v1088_v25  ;;  %v1091_v16 = vpack.c.bf16 %v889_v56, %v889_v56  ;;  %v887_v18 = vmax.f32 %v863_v10, 0.0 }
 0x136   :  { %962 = vst.msk [vmem:[%s1778_s3 + $0x1c] sm:$0xf] %vm954_vm1, %v1083_v11  ;;  %v1081_v20 = vpack.c.bf16 %v879_v12, %v879_v12 }
 0x137   :  { %970 = vst.msk [vmem:[%s1778_s3 + $0x3c] sm:$0xf] %vm954_vm1, %v1091_v16  ;;  %v1089_v22 = vpack.c.bf16 %v887_v18, %v887_v18 }
 0x138   :  { %960 = vst.msk [vmem:[%s1778_s3 + $0x14] sm:$0xf] %vm954_vm1, %v1081_v20 }
 0x139   :  { %968 = vst.msk [vmem:[%s1778_s3 + $0x34] sm:$0xf] %vm954_vm1, %v1089_v22 }

// kernel: high_resolution_branch.11
= control target key start
LH: loop header
LB: loop body
LE: loop exit
PB: predicated region body
PF: predicated region fallthrough
CT: control target
= control target key end

     0   :  { %vm372_vm0 = vcmask 523264   ;;  %vm546_vm1 = vcmask 519168   ;;  %s913_s1 = inlined_call_operand.vmem [shape: bf16[576,64], index: 1, kind: input, shape index: {}]   ;;  %s914_s0 = inlined_call_operand.vmem [shape: bf16[32,576], index: 0, kind: input, shape index: {}]   ;;  %s915_s2 = inlined_call_operand.vmem [shape: f32[1,64], index: 2, kind: input, shape index: {}]   ;;  %s916_s3 = inlined_call_operand.vmem [shape: bf16[32,64], index: 3, kind: output, shape index: {}]  }
   0x1   :  { %v686_v0 = vld [vmem:[%s913_s1 + $0x78] sm:$0xff]   ;;  %v690_v4 = vld [vmem:[%s913_s1 + $0x70] sm:$0xff]   ;;  %v694_v8 = vld [vmem:[%s913_s1 + $0x68] sm:$0xff]  }
   0x2   :  { %v687_v1 = vld [vmem:[%s913_s1 + $0xf8] sm:$0xff]   ;;  %612 = vmatprep.subr.bf16.mxu0 %v686_v0  ;;  %v691_v5 = vld [vmem:[%s913_s1 + $0xf0] sm:$0xff]   ;;  %v695_v9 = vld [vmem:[%s913_s1 + $0xe8] sm:$0xff]  }
   0x3   :  { %v688_v2 = vld [vmem:[%s913_s1 + $0x38] sm:$0xff]   ;;  %640 = vmatprep.subr.bf16.mxu1 %v687_v1  ;;  %v692_v6 = vld [vmem:[%s913_s1 + $0x30] sm:$0xff]   ;;  %v696_v10 = vld [vmem:[%s913_s1 + $0x28] sm:$0xff]  }
   0x4   :  { %v689_v3 = vld [vmem:[%s913_s1 + $0xb8] sm:$0xff]   ;;  %613 = vmatpush3.bf16.msra.mxu0 %v688_v2  ;;  %v693_v7 = vld [vmem:[%s913_s1 + $0xb0] sm:$0xff]   ;;  %v697_v11 = vld [vmem:[%s913_s1 + $0xa8] sm:$0xff]  }
   0x5   :  { %641 = vmatpush3.bf16.msra.mxu1 %v689_v3  ;;  %614 = vmatprep.subr.bf16.mxu0 %v690_v4  ;;  %v698_v12 = vld [vmem:[%s913_s1 + $0x60] sm:$0xff]   ;;  %v702_v16 = vld [vmem:[%s913_s1 + $0x58] sm:$0xff]   ;;  %v706_v20 = vld [vmem:[%s913_s1 + $0x50] sm:$0xff]  }
   0x6   :  { %642 = vmatprep.subr.bf16.mxu1 %v691_v5  ;;  %v699_v13 = vld [vmem:[%s913_s1 + $0xe0] sm:$0xff]   ;;  %v703_v17 = vld [vmem:[%s913_s1 + $0xd8] sm:$0xff]   ;;  %v707_v21 = vld [vmem:[%s913_s1 + $0xd0] sm:$0xff]  }
   0x7   :  { %v700_v14 = vld [vmem:[%s913_s1 + $0x20] sm:$0xff]   ;;  %v704_v18 = vld [vmem:[%s913_s1 + $0x18] sm:$0xff]   ;;  %v708_v22 = vld [vmem:[%s913_s1 + $0x10] sm:$0xff]  }
   0x8   :  { %615 = vmatpush3.bf16.msra.mxu0 %v692_v6  ;;  %v701_v15 = vld [vmem:[%s913_s1 + $0xa0] sm:$0xff]   ;;  %v705_v19 = vld [vmem:[%s913_s1 + $0x98] sm:$0xff]   ;;  %v709_v23 = vld [vmem:[%s913_s1 + $0x90] sm:$0xff]  }
   0x9   :  { %643 = vmatpush3.bf16.msra.mxu1 %v693_v7  ;;  %616 = vmatprep.subr.bf16.mxu0 %v694_v8  ;;  %v710_v24 = vld [vmem:[%s913_s1 + $0x48] sm:$0xff]   ;;  %v714_v28 = vld [vmem:[%s913_s1 + $0x40] sm:$0xff]   ;;  %v724_v36 = vld [vmem:[%s913_s1 + $0x118] sm:$0xff]  }
   0xa   :  { %644 = vmatprep.subr.bf16.mxu1 %v695_v9  ;;  %v711_v25 = vld [vmem:[%s913_s1 + $0xc8] sm:$0xff]   ;;  %v715_v29 = vld [vmem:[%s913_s1 + $0xc0] sm:$0xff]   ;;  %v725_v37 = vld [vmem:[%s913_s1 + $0x110] sm:$0xff]  }
   0xb   :  { %v712_v26 = vld [vmem:[%s913_s1 + $0x8] sm:$0xff]   ;;  %v716_v30 = vld [vmem:[%s913_s1] sm:$0xff]  }
   0xc   :  { %617 = vmatpush3.bf16.msra.mxu0 %v696_v10  ;;  %v713_v27 = vld [vmem:[%s913_s1 + $0x88] sm:$0xff]   ;;  %v717_v31 = vld [vmem:[%s913_s1 + $0x80] sm:$0xff]  }
   0xd   :  { %645 = vmatpush3.bf16.msra.mxu1 %v697_v11  ;;  %618 = vmatprep.subr.bf16.mxu0 %v698_v12  ;;  %v718_v32 = vld [vmem:[%s914_s0] ss:$20 sps:$4 sm:$0xff]   ;;  %v720_v33 = vld [vmem:[%s914_s0 + $0x4] ss:$20 sps:$4 sm:$0xff]   ;;  %v721_v34 = vld [vmem:[%s914_s0 + $0x8] ss:$20 sps:$4 sm:$0xff]  }
   0xe   :  { %646 = vmatprep.subr.bf16.mxu1 %v699_v13  ;;  %v723_v35 = vld [vmem:[%s914_s0 + $0xc] ss:$20 sps:$4 sm:$0xff]   ;;  %411 = vmatprep.mubr.bf16.mxu0 %v720_v33  ;;  %v728_v39 = vld [vmem:[%s914_s0 + $0x34] ss:$20 sps:$4 sm:$0xff]   ;;  %v731_v42 = vld [vmem:[%s914_s0 + $0x30] ss:$20 sps:$4 sm:$0xff]  }
   0xf   :  { %460 = vmatprep.mubr.bf16.mxu1 %v723_v35  ;;  %v726_v38 = vld [vmem:[%s914_s0 + $0x2c] ss:$20 sps:$4 sm:$0xff]   ;;  %v730_v40 = vld [vmem:[%s914_s0 + $0x28] ss:$20 sps:$4 sm:$0xff]   ;;  %v734_v43 = vld [vmem:[%s914_s0 + $0x10] ss:$20 sps:$4 sm:$0xff]  }
  0x10   :  { %619 = vmatpush3.bf16.msra.mxu0 %v700_v14  ;;  %v732_v41 = vld [vmem:[%s913_s1 + $0x108] sm:$0xff]   ;;  %v733_v44 = vld [vmem:[%s913_s1 + $0x100] sm:$0xff]  }
  0x11   :  { %647 = vmatpush3.bf16.msra.mxu1 %v701_v15  ;;  %620 = vmatprep.subr.bf16.mxu0 %v702_v16  ;;  %v735_v45 = vld [vmem:[%s914_s0 + $0x38] ss:$20 sps:$4 sm:$0xff]   ;;  %v555_v58 = vld [vmem:[%s915_s2] ss:$0 sm:$0xff] }
  0x12   :  { %648 = vmatprep.subr.bf16.mxu1 %v703_v17 }
  0x14   :  { %621 = vmatpush3.bf16.msra.mxu0 %v704_v18 }
  0x15   :  { %649 = vmatpush3.bf16.msra.mxu1 %v705_v19  ;;  %622 = vmatprep.subr.bf16.mxu0 %v706_v20 }
  0x16   :  { %650 = vmatprep.subr.bf16.mxu1 %v707_v21 }
  0x18   :  { %623 = vmatpush3.bf16.msra.mxu0 %v708_v22 }
  0x19   :  { %651 = vmatpush3.bf16.msra.mxu1 %v709_v23  ;;  %624 = vmatprep.subr.bf16.mxu0 %v710_v24 }
  0x1a   :  { %652 = vmatprep.subr.bf16.mxu1 %v711_v25 }
  0x1c   :  { %625 = vmatpush3.bf16.msra.mxu0 %v712_v26 }
  0x1d   :  { %653 = vmatpush3.bf16.msra.mxu1 %v713_v27  ;;  %626 = vmatprep.subr.bf16.mxu0 %v714_v28 }
  0x1e   :  { %654 = vmatprep.subr.bf16.mxu1 %v715_v29 }
  0x20   :  { %627 = vmatpush3.bf16.msra.mxu0 %v716_v30 }
  0x21   :  { %655 = vmatpush3.bf16.msra.mxu1 %v717_v31  ;;  %674 = vmatprep.subr.bf16.mxu0 %v724_v36 }
  0x23   :  { %412 = vmatmul.mubr.bf16.vlgmr.msra.gmra.mxu0 %v718_v32 }
  0x24   :  { %461 = vmatmul.mubr.bf16.vlgmr.msra.gmra.mxu1 %v721_v34  ;;  %675 = vmatpush3.bf16.msra.mxu0 %v724_v36 }
  0x25   :  { %676 = vmatprep.subr.bf16.mxu0 %v725_v37  ;;  %419 = vmatprep.mubr.bf16.mxu0 %v726_v38 }
  0x26   :  { %468 = vmatprep.mubr.bf16.mxu1 %v728_v39 }
  0x28   :  { %677 = vmatpush3.bf16.msra.mxu0 %v725_v37 }
  0x29   :  { %678 = vmatprep.subr.bf16.mxu0 %v732_v41 }
  0x2b   :  { %420 = vmatmul.mubr.bf16.gmra.mxu0 %v730_v40 }
  0x2c   :  { %469 = vmatmul.mubr.bf16.gmra.mxu1 %v731_v42  ;;  %682 = vmatprep.mubr.msk.bf16.mxu0 %vm372_vm0, %v734_v43 }
  0x2d   :  { %679 = vmatpush3.bf16.msra.mxu0 %v732_v41 }
  0x2e   :  { %680 = vmatprep.subr.bf16.mxu0 %v733_v44 }
  0x31   :  { %681 = vmatpush3.bf16.msra.mxu0 %v733_v44 }
  0x34   :  { %683 = vmatmul.mubr.msk.bf16.vlgmr.msra.gmra.mxu0 %vm372_vm0, %v735_v45 }
  0xe3   :  { %v628_v46 = vpop.f32.mrf.mxu0 }
  0xe4   :  { %v656_v47 = vpop.f32.mrf.mxu1 }
  0xe5   :  { %v629_v48 = vpop.f32.mrf.mxu0 }
  0xe6   :  { %v657_v49 = vpop.f32.mrf.mxu1  ;;  %v630_v56 = vadd.f32 %v629_v48, %v628_v46 }
  0xe7   :  { %v631_v50 = vpop.f32.mrf.mxu0  ;;  %v658_v2 = vadd.f32 %v657_v49, %v656_v47 }
  0xe8   :  { %v659_v51 = vpop.f32.mrf.mxu1  ;;  %v414_v1 = vadd.f32 %v630_v56, %v555_v58 }
  0xe9   :  { %v632_v52 = vpop.f32.mrf.mxu0 }
  0xea   :  { %v660_v53 = vpop.f32.mrf.mxu1  ;;  %v633_v3 = vadd.f32 %v632_v52, %v631_v50  ;;  %v463_v13 = vadd.f32 %v658_v2, %v414_v1 }
  0xeb   :  { %v634_v54 = vpop.f32.mrf.mxu0  ;;  %v661_v16 = vadd.f32 %v660_v53, %v659_v51 }
  0xec   :  { %v662_v55 = vpop.f32.mrf.mxu1  ;;  %v417_v11 = vadd.f32 %v633_v3, %v555_v58 }
  0xed   :  { %v635_v57 = vpop.f32.mrf.mxu0 }
  0xee   :  { %v636_v59 = vadd.f32 %v635_v57, %v634_v54  ;;  %v663_v60 = vpop.f32.mrf.mxu1  ;;  %v466_v23 = vadd.f32 %v661_v16, %v417_v11 }
  0xef   :  { %v664_v61 = vadd.f32 %v663_v60, %v662_v55  ;;  %v637_v62 = vpop.f32.mrf.mxu0 }
  0xf0   :  { %v422_v63 = vadd.f32 %v636_v59, %v555_v58  ;;  %v665_v0 = vpop.f32.mrf.mxu1 }
  0xf1   :  { %v638_v4 = vpop.f32.mrf.mxu0 }
  0xf2   :  { %v639_v5 = vadd.f32 %v638_v4, %v637_v62  ;;  %v666_v6 = vpop.f32.mrf.mxu1  ;;  %v471_v7 = vadd.f32 %v664_v61, %v422_v63 }
  0xf3   :  { %v667_v9 = vadd.f32 %v666_v6, %v665_v0 }
  0xf4   :  { %v425_v8 = vadd.f32 %v639_v5, %v555_v58  ;;  %v684_v10 = vpop.f32.mrf.mxu0 }
  0xf5   :  { %v520_v12 = vadd.f32 %v684_v10, %v471_v7 }
  0xf6   :  { %v511_v14 = vpop.f32.mrf.mxu0  ;;  %v474_v15 = vadd.f32 %v667_v9, %v425_v8 }
  0xf7   :  { %v528_v17 = vmax.f32 %v520_v12, 0.0  ;;  %v512_v18 = vadd.f32 %v511_v14, %v463_v13 }
  0xf8   :  { %v685_v19 = vpop.f32.mrf.mxu0 }
  0xf9   :  { %v610_v20 = vpack.c.bf16 %v528_v17, %v528_v17  ;;  %v526_v21 = vmax.f32 %v512_v18, 0.0  ;;  %v523_v22 = vadd.f32 %v685_v19, %v474_v15 }
  0xfa   :  { %v514_v24 = vpop.f32.mrf.mxu0 }
  0xfb   :  { %549 = vst.msk [vmem:[%s916_s3 + $0x8] sm:$0xf] %vm546_vm1, %v610_v20  ;;  %v608_v25 = vpack.c.bf16 %v526_v21, %v526_v21  ;;  %v529_v26 = vmax.f32 %v523_v22, 0.0  ;;  %v515_v27 = vadd.f32 %v514_v24, %v466_v23 }
  0xfd   :  { %547 = vst.msk [vmem:[%s916_s3] sm:$0xf] %vm546_vm1, %v608_v25  ;;  %v611_v28 = vpack.c.bf16 %v529_v26, %v529_v26  ;;  %v527_v29 = vmax.f32 %v515_v27, 0.0 }
  0xff   :  { %550 = vst.msk [vmem:[%s916_s3 + $0xc] sm:$0xf] %vm546_vm1, %v611_v28  ;;  %v609_v30 = vpack.c.bf16 %v527_v29, %v527_v29 }
 0x101   :  { %548 = vst.msk [vmem:[%s916_s3 + $0x4] sm:$0xf] %vm546_vm1, %v609_v30 }

// kernel: high_resolution_branch.14
= control target key start
LH: loop header
LB: loop body
LE: loop exit
PB: predicated region body
PF: predicated region fallthrough
CT: control target
= control target key end

     0   :  { %vm372_vm0 = vcmask 523264   ;;  %s913_s1 = inlined_call_operand.vmem [shape: bf16[576,128], index: 1, kind: input, shape index: {}]   ;;  %s914_s0 = inlined_call_operand.vmem [shape: bf16[32,576], index: 0, kind: input, shape index: {}]   ;;  %s915_s2 = inlined_call_operand.vmem [shape: f32[1,128], index: 2, kind: input, shape index: {}]   ;;  %s916_s3 = inlined_call_operand.vmem [shape: bf16[32,128], index: 3, kind: output, shape index: {}]  }
   0x1   :  { %v696_v0 = vld [vmem:[%s913_s1 + $0x78] sm:$0xff]   ;;  %v700_v4 = vld [vmem:[%s913_s1 + $0x70] sm:$0xff]   ;;  %v704_v8 = vld [vmem:[%s913_s1 + $0x68] sm:$0xff]  }
   0x2   :  { %v697_v1 = vld [vmem:[%s913_s1 + $0xf8] sm:$0xff]   ;;  %622 = vmatprep.subr.bf16.mxu0 %v696_v0  ;;  %v701_v5 = vld [vmem:[%s913_s1 + $0xf0] sm:$0xff]   ;;  %v705_v9 = vld [vmem:[%s913_s1 + $0xe8] sm:$0xff]  }
   0x3   :  { %v698_v2 = vld [vmem:[%s913_s1 + $0x38] sm:$0xff]   ;;  %650 = vmatprep.subr.bf16.mxu1 %v697_v1  ;;  %v702_v6 = vld [vmem:[%s913_s1 + $0x30] sm:$0xff]   ;;  %v706_v10 = vld [vmem:[%s913_s1 + $0x28] sm:$0xff]  }
   0x4   :  { %v699_v3 = vld [vmem:[%s913_s1 + $0xb8] sm:$0xff]   ;;  %623 = vmatpush3.bf16.msra.mxu0 %v698_v2  ;;  %v703_v7 = vld [vmem:[%s913_s1 + $0xb0] sm:$0xff]   ;;  %v707_v11 = vld [vmem:[%s913_s1 + $0xa8] sm:$0xff]  }
   0x5   :  { %651 = vmatpush3.bf16.msra.mxu1 %v699_v3  ;;  %624 = vmatprep.subr.bf16.mxu0 %v700_v4  ;;  %v708_v12 = vld [vmem:[%s913_s1 + $0x60] sm:$0xff]   ;;  %v712_v16 = vld [vmem:[%s913_s1 + $0x58] sm:$0xff]   ;;  %v716_v20 = vld [vmem:[%s913_s1 + $0x50] sm:$0xff]  }
   0x6   :  { %652 = vmatprep.subr.bf16.mxu1 %v701_v5  ;;  %v709_v13 = vld [vmem:[%s913_s1 + $0xe0] sm:$0xff]   ;;  %v713_v17 = vld [vmem:[%s913_s1 + $0xd8] sm:$0xff]   ;;  %v717_v21 = vld [vmem:[%s913_s1 + $0xd0] sm:$0xff]  }
   0x7   :  { %v710_v14 = vld [vmem:[%s913_s1 + $0x20] sm:$0xff]   ;;  %v714_v18 = vld [vmem:[%s913_s1 + $0x18] sm:$0xff]   ;;  %v718_v22 = vld [vmem:[%s913_s1 + $0x10] sm:$0xff]  }
   0x8   :  { %625 = vmatpush3.bf16.msra.mxu0 %v702_v6  ;;  %v711_v15 = vld [vmem:[%s913_s1 + $0xa0] sm:$0xff]   ;;  %v715_v19 = vld [vmem:[%s913_s1 + $0x98] sm:$0xff]   ;;  %v719_v23 = vld [vmem:[%s913_s1 + $0x90] sm:$0xff]  }
   0x9   :  { %653 = vmatpush3.bf16.msra.mxu1 %v703_v7  ;;  %626 = vmatprep.subr.bf16.mxu0 %v704_v8  ;;  %v720_v24 = vld [vmem:[%s913_s1 + $0x48] sm:$0xff]   ;;  %v724_v28 = vld [vmem:[%s913_s1 + $0x40] sm:$0xff]   ;;  %v734_v36 = vld [vmem:[%s913_s1 + $0x118] sm:$0xff]  }
   0xa   :  { %654 = vmatprep.subr.bf16.mxu1 %v705_v9  ;;  %v721_v25 = vld [vmem:[%s913_s1 + $0xc8] sm:$0xff]   ;;  %v725_v29 = vld [vmem:[%s913_s1 + $0xc0] sm:$0xff]   ;;  %v735_v37 = vld [vmem:[%s913_s1 + $0x110] sm:$0xff]  }
   0xb   :  { %v722_v26 = vld [vmem:[%s913_s1 + $0x8] sm:$0xff]   ;;  %v726_v30 = vld [vmem:[%s913_s1] sm:$0xff]  }
   0xc   :  { %627 = vmatpush3.bf16.msra.mxu0 %v706_v10  ;;  %v723_v27 = vld [vmem:[%s913_s1 + $0x88] sm:$0xff]   ;;  %v727_v31 = vld [vmem:[%s913_s1 + $0x80] sm:$0xff]  }
   0xd   :  { %655 = vmatpush3.bf16.msra.mxu1 %v707_v11  ;;  %628 = vmatprep.subr.bf16.mxu0 %v708_v12  ;;  %v728_v32 = vld [vmem:[%s914_s0] ss:$20 sps:$4 sm:$0xff]   ;;  %v730_v33 = vld [vmem:[%s914_s0 + $0x4] ss:$20 sps:$4 sm:$0xff]   ;;  %v731_v34 = vld [vmem:[%s914_s0 + $0x8] ss:$20 sps:$4 sm:$0xff]  }
   0xe   :  { %656 = vmatprep.subr.bf16.mxu1 %v709_v13  ;;  %v733_v35 = vld [vmem:[%s914_s0 + $0xc] ss:$20 sps:$4 sm:$0xff]   ;;  %411 = vmatprep.mubr.bf16.mxu0 %v730_v33  ;;  %v738_v39 = vld [vmem:[%s914_s0 + $0x34] ss:$20 sps:$4 sm:$0xff]   ;;  %v741_v42 = vld [vmem:[%s914_s0 + $0x30] ss:$20 sps:$4 sm:$0xff]  }
   0xf   :  { %460 = vmatprep.mubr.bf16.mxu1 %v733_v35  ;;  %v736_v38 = vld [vmem:[%s914_s0 + $0x2c] ss:$20 sps:$4 sm:$0xff]   ;;  %v740_v40 = vld [vmem:[%s914_s0 + $0x28] ss:$20 sps:$4 sm:$0xff]   ;;  %v744_v43 = vld [vmem:[%s914_s0 + $0x10] ss:$20 sps:$4 sm:$0xff]  }
  0x10   :  { %629 = vmatpush3.bf16.msra.mxu0 %v710_v14  ;;  %v742_v41 = vld [vmem:[%s913_s1 + $0x108] sm:$0xff]   ;;  %v743_v44 = vld [vmem:[%s913_s1 + $0x100] sm:$0xff]  }
  0x11   :  { %657 = vmatpush3.bf16.msra.mxu1 %v711_v15  ;;  %630 = vmatprep.subr.bf16.mxu0 %v712_v16  ;;  %v745_v45 = vld [vmem:[%s914_s0 + $0x38] ss:$20 sps:$4 sm:$0xff]   ;;  %v554_v59 = vld [vmem:[%s915_s2] ss:$0 sm:$0xff] }
  0x12   :  { %658 = vmatprep.subr.bf16.mxu1 %v713_v17 }
  0x14   :  { %631 = vmatpush3.bf16.msra.mxu0 %v714_v18 }
  0x15   :  { %659 = vmatpush3.bf16.msra.mxu1 %v715_v19  ;;  %632 = vmatprep.subr.bf16.mxu0 %v716_v20 }
  0x16   :  { %660 = vmatprep.subr.bf16.mxu1 %v717_v21 }
  0x18   :  { %633 = vmatpush3.bf16.msra.mxu0 %v718_v22 }
  0x19   :  { %661 = vmatpush3.bf16.msra.mxu1 %v719_v23  ;;  %634 = vmatprep.subr.bf16.mxu0 %v720_v24 }
  0x1a   :  { %662 = vmatprep.subr.bf16.mxu1 %v721_v25 }
  0x1c   :  { %635 = vmatpush3.bf16.msra.mxu0 %v722_v26 }
  0x1d   :  { %663 = vmatpush3.bf16.msra.mxu1 %v723_v27  ;;  %636 = vmatprep.subr.bf16.mxu0 %v724_v28 }
  0x1e   :  { %664 = vmatprep.subr.bf16.mxu1 %v725_v29 }
  0x20   :  { %637 = vmatpush3.bf16.msra.mxu0 %v726_v30 }
  0x21   :  { %665 = vmatpush3.bf16.msra.mxu1 %v727_v31  ;;  %684 = vmatprep.subr.bf16.mxu0 %v734_v36 }
  0x23   :  { %412 = vmatmul.mubr.bf16.vlgmr.msra.gmra.mxu0 %v728_v32 }
  0x24   :  { %461 = vmatmul.mubr.bf16.vlgmr.msra.gmra.mxu1 %v731_v34  ;;  %685 = vmatpush3.bf16.msra.mxu0 %v734_v36 }
  0x25   :  { %686 = vmatprep.subr.bf16.mxu0 %v735_v37  ;;  %419 = vmatprep.mubr.bf16.mxu0 %v736_v38 }
  0x26   :  { %468 = vmatprep.mubr.bf16.mxu1 %v738_v39 }
  0x28   :  { %687 = vmatpush3.bf16.msra.mxu0 %v735_v37 }
  0x29   :  { %688 = vmatprep.subr.bf16.mxu0 %v742_v41 }
  0x2b   :  { %420 = vmatmul.mubr.bf16.gmra.mxu0 %v740_v40 }
  0x2c   :  { %469 = vmatmul.mubr.bf16.gmra.mxu1 %v741_v42  ;;  %692 = vmatprep.mubr.msk.bf16.mxu0 %vm372_vm0, %v744_v43 }
  0x2d   :  { %689 = vmatpush3.bf16.msra.mxu0 %v742_v41 }
  0x2e   :  { %690 = vmatprep.subr.bf16.mxu0 %v743_v44 }
  0x31   :  { %691 = vmatpush3.bf16.msra.mxu0 %v743_v44 }
  0x34   :  { %693 = vmatmul.mubr.msk.bf16.vlgmr.msra.gmra.mxu0 %vm372_vm0, %v745_v45 }
  0xe3   :  { %v638_v46 = vpop.f32.mrf.mxu0 }
  0xe4   :  { %v666_v47 = vpop.f32.mrf.mxu1 }
  0xe5   :  { %v639_v48 = vpop.f32.mrf.mxu0 }
  0xe6   :  { %v667_v49 = vpop.f32.mrf.mxu1  ;;  %v640_v60 = vadd.f32 %v639_v48, %v638_v46 }
  0xe7   :  { %v641_v50 = vpop.f32.mrf.mxu0  ;;  %v668_v6 = vadd.f32 %v667_v49, %v666_v47 }
  0xe8   :  { %v669_v51 = vpop.f32.mrf.mxu1  ;;  %v414_v5 = vadd.f32 %v640_v60, %v554_v59 }
  0xe9   :  { %v642_v52 = vpop.f32.mrf.mxu0 }
  0xea   :  { %v670_v53 = vpop.f32.mrf.mxu1  ;;  %v643_v1 = vadd.f32 %v642_v52, %v641_v50  ;;  %v463_v16 = vadd.f32 %v668_v6, %v414_v5 }
  0xeb   :  { %v644_v54 = vpop.f32.mrf.mxu0  ;;  %v671_v14 = vadd.f32 %v670_v53, %v669_v51 }
  0xec   :  { %v672_v55 = vpop.f32.mrf.mxu1  ;;  %v417_v11 = vadd.f32 %v643_v1, %v554_v59 }
  0xed   :  { %v645_v56 = vpop.f32.mrf.mxu0 }
  0xee   :  { %v646_v57 = vadd.f32 %v645_v56, %v644_v54  ;;  %v673_v58 = vpop.f32.mrf.mxu1  ;;  %v466_v20 = vadd.f32 %v671_v14, %v417_v11 }
  0xef   :  { %v674_v61 = vadd.f32 %v673_v58, %v672_v55  ;;  %v647_v62 = vpop.f32.mrf.mxu0 }
  0xf0   :  { %v422_v63 = vadd.f32 %v646_v57, %v554_v59  ;;  %v675_v0 = vpop.f32.mrf.mxu1 }
  0xf1   :  { %v648_v2 = vpop.f32.mrf.mxu0 }
  0xf2   :  { %v649_v3 = vadd.f32 %v648_v2, %v647_v62  ;;  %v676_v4 = vpop.f32.mrf.mxu1  ;;  %v471_v7 = vadd.f32 %v674_v61, %v422_v63 }
  0xf3   :  { %v677_v9 = vadd.f32 %v676_v4, %v675_v0 }
  0xf4   :  { %v425_v8 = vadd.f32 %v649_v3, %v554_v59  ;;  %v694_v10 = vpop.f32.mrf.mxu0 }
  0xf5   :  { %v520_v15 = vadd.f32 %v694_v10, %v471_v7 }
  0xf6   :  { %v511_v12 = vpop.f32.mrf.mxu0  ;;  %v474_v13 = vadd.f32 %v677_v9, %v425_v8 }
  0xf7   :  { %v512_v18 = vadd.f32 %v511_v12, %v463_v16  ;;  %v528_v22 = vmax.f32 %v520_v15, 0.0 }
  0xf8   :  { %v695_v17 = vpop.f32.mrf.mxu0 }
  0xf9   :  { %v523_v19 = vadd.f32 %v695_v17, %v474_v13  ;;  %v526_v25 = vmax.f32 %v512_v18, 0.0 }
  0xfa   :  { %v514_v21 = vpop.f32.mrf.mxu0 }
  0xfb   :  { %v529_v23 = vmax.f32 %v523_v19, 0.0  ;;  %v515_v24 = vadd.f32 %v514_v21, %v466_v20 }
  0xfd   :  { %v619_v26 = vpack.c.bf16 %v529_v23, %v528_v22  ;;  %v527_v27 = vmax.f32 %v515_v24, 0.0 }
  0xff   :  { %621 = vst [vmem:[%s916_s3 + $0x8] sm:$0xff] %v619_v26   ;;  %v614_v28 = vpack.c.bf16 %v527_v27, %v526_v25 }
 0x101   :  { %615 = vst [vmem:[%s916_s3] sm:$0xff] %v614_v28  }

// kernel: high_resolution_branch.17
= control target key start
LH: loop header
LB: loop body
LE: loop exit
PB: predicated region body
PF: predicated region fallthrough
CT: control target
= control target key end

     0   :  { %vm33_vm0 = vcmask 1041408   ;;  %vm98_vm1 = vcmask 1041409   ;;  %s228_s0 = inlined_call_operand.vmem [shape: f32[4,2,2,2,128], index: 0, kind: input, shape index: {}]   ;;  %s229_s1 = inlined_call_operand.hbm [shape: f32[4,2,128], index: 1, kind: output, shape index: {}]  }
   0x1   :  { %v9_v0 = vld [vmem:[%s228_s0] sm:$0x3]  ;;  %v10_v1 = vld [vmem:[%s228_s0 + $0x2] sm:$0x3]  ;;  %v11_v2 = vld [vmem:[%s228_s0 + $0x4] sm:$0x3] }
   0x2   :  { %v12_v3 = vld [vmem:[%s228_s0 + $0x6] sm:$0x3]  ;;  %v25_v4 = vmax.f32 %v9_v0, %v11_v2  ;;  %v13_v5 = vld [vmem:[%s228_s0 + $0x8] sm:$0x3]  ;;  %v14_v7 = vld [vmem:[%s228_s0 + $0xa] sm:$0x3] }
   0x3   :  { %v26_v6 = vmax.f32 %v10_v1, %v12_v3  ;;  %v15_v8 = vld [vmem:[%s228_s0 + $0xc] sm:$0x3]  ;;  %v16_v9 = vld [vmem:[%s228_s0 + $0xe] sm:$0x3]  ;;  %v17_v13 = vld [vmem:[%s228_s0 + $0x10] sm:$0x3] }
   0x4   :  { %v34_v10 = vsel %vm33_vm0, %v25_v4, -inf  ;;  %v27_v11 = vmax.f32 %v13_v5, %v15_v8  ;;  %v28_v12 = vmax.f32 %v14_v7, %v16_v9  ;;  %v18_v14 = vld [vmem:[%s228_s0 + $0x12] sm:$0x3]  ;;  %v19_v17 = vld [vmem:[%s228_s0 + $0x14] sm:$0x3] }
   0x5   :  { %v35_v15 = vrot.slane %v34_v10, 4  ;;  %v41_v16 = vsel %vm33_vm0, %v26_v6, -inf  ;;  %v20_v18 = vld [vmem:[%s228_s0 + $0x16] sm:$0x3]  ;;  %v29_v22 = vmax.f32 %v17_v13, %v19_v17  ;;  %v21_v23 = vld [vmem:[%s228_s0 + $0x18] sm:$0x3] }
   0x6   :  { %v42_v19 = vrot.slane %v41_v16, 4  ;;  %v48_v20 = vsel %vm33_vm0, %v27_v11, -inf  ;;  %v55_v21 = vsel %vm33_vm0, %v28_v12, -inf  ;;  %v30_v27 = vmax.f32 %v18_v14, %v20_v18  ;;  %v22_v28 = vld [vmem:[%s228_s0 + $0x1a] sm:$0x3] }
   0x7   :  { %v36_v24 = vmax.f32 %v34_v10, %v35_v15  ;;  %v49_v25 = vrot.slane %v48_v20, 4  ;;  %v56_v26 = vrot.slane %v55_v21, 4  ;;  %v23_v29 = vld [vmem:[%s228_s0 + $0x1c] sm:$0x3]  ;;  %v62_v31 = vsel %vm33_vm0, %v29_v22, -inf }
   0x8   :  { %v43_v30 = vmax.f32 %v41_v16, %v42_v19  ;;  %v24_v32 = vld [vmem:[%s228_s0 + $0x1e] sm:$0x3]  ;;  %v31_v33 = vmax.f32 %v21_v23, %v23_v29 }
   0x9   :  { %6 = vsyncpa [#allocation3], 0  ;;  %v37_v34 = vrot.slane %v36_v24, 2  ;;  %v50_v35 = vmax.f32 %v48_v20, %v49_v25  ;;  %v57_v36 = vmax.f32 %v55_v21, %v56_v26  ;;  %v63_v37 = vrot.slane %v62_v31, 4  ;;  %s152_s0 = smov [#allocation2]  }
   0xa   :  { %v44_v38 = vrot.slane %v43_v30, 2  ;;  %v69_v39 = vsel %vm33_vm0, %v30_v27, -inf  ;;  %v32_v40 = vmax.f32 %v22_v28, %v24_v32  ;;  %v76_v41 = vsel %vm33_vm0, %v31_v33, -inf  ;;  %s116_s9 = sshll.u32 %s152_s0, 4  ;;  %s117_s9 = int_to_ptr.vmem [resolvable:$true] %s116_s9 }
   0xb   :  { %v38_v42 = vmax.f32 %v36_v24, %v37_v34  ;;  %v51_v43 = vrot.slane %v50_v35, 2  ;;  %v58_v44 = vrot.slane %v57_v36, 2  ;;  %v64_v45 = vmax.f32 %v62_v31, %v63_v37  ;;  %s130_s10 = scalar_lea.vmem %s117_s9, 128  ;;  %p135_p1 = scmp.lt.s32.totalorder %s117_s9, %s117_s9 }
   0xc   :  { %v45_v46 = vmax.f32 %v43_v30, %v44_v38  ;;  %v70_v47 = vrot.slane %v69_v39, 4  ;;  %v77_v48 = vrot.slane %v76_v41, 4  ;;  %v83_v49 = vsel %vm33_vm0, %v32_v40, -inf  ;;  %p131_p0 = scmp.ne.s32.totalorder %s117_s9, %s130_s10  ;;  %p136_p2 = scmp.lt.s32.totalorder %s130_s10, %s130_s10 }
   0xd   :  { %v39_v50 = vrot.slane %v38_v42, 1  ;;  %v52_v51 = vmax.f32 %v50_v35, %v51_v43  ;;  %v59_v52 = vmax.f32 %v57_v36, %v58_v44  ;;  %v65_v53 = vrot.slane %v64_v45, 2 }
   0xe   :  { %v46_v54 = vrot.slane %v45_v46, 1  ;;  %v71_v55 = vmax.f32 %v69_v39, %v70_v47  ;;  %v78_v56 = vmax.f32 %v76_v41, %v77_v48  ;;  %v84_v57 = vrot.slane %v83_v49, 4  ;;  %p137_p3 = por %p136_p2, %p135_p1 }
   0xf   :  { %v40_v58 = vmax.f32 %v38_v42, %v39_v50  ;;  %v53_v59 = vrot.slane %v52_v51, 1  ;;  %v60_v60 = vrot.slane %v59_v52, 1  ;;  %v66_v61 = vmax.f32 %v64_v45, %v65_v53 }
  0x10   :  { %v47_v62 = vmax.f32 %v45_v46, %v46_v54  ;;  %v72_v63 = vrot.slane %v71_v55, 2  ;;  %v79_v0 = vrot.slane %v78_v56, 2  ;;  %v85_v1 = vmax.f32 %v83_v49, %v84_v57  ;;  %p138_p4 = pnand %p137_p3, %p131_p0 }
  0x11   :  { %v54_v2 = vmax.f32 %v52_v51, %v53_v59  ;;  %v61_v3 = vmax.f32 %v59_v52, %v60_v60  ;;  %v67_v4 = vrot.slane %v66_v61, 1 }
  0x12   :  { %v99_v5 = vsel %vm98_vm1, %v47_v62, %v40_v58  ;;  %v73_v6 = vmax.f32 %v71_v55, %v72_v63  ;;  %v80_v7 = vmax.f32 %v78_v56, %v79_v0  ;;  %v86_v8 = vrot.slane %v85_v1, 2 }
  0x13   :  { %107 = vst [vmem:[#allocation2] sm:$0x3] %v99_v5  ;;  %v100_v9 = vsel %vm98_vm1, %v61_v3, %v54_v2  ;;  %v68_v10 = vmax.f32 %v66_v61, %v67_v4 }
  0x14   :  { %108 = vst [vmem:[#allocation2 + $0x2] sm:$0x3] %v100_v9  ;;  %v74_v11 = vrot.slane %v73_v6, 1  ;;  %v81_v12 = vrot.slane %v80_v7, 1  ;;  %v87_v13 = vmax.f32 %v85_v1, %v86_v8 }
  0x16   :  { %v75_v14 = vmax.f32 %v73_v6, %v74_v11  ;;  %v82_v15 = vmax.f32 %v80_v7, %v81_v12  ;;  %v88_v16 = vrot.slane %v87_v13, 1 }
  0x18   :  { %v101_v17 = vsel %vm98_vm1, %v75_v14, %v68_v10  ;;  %v89_v18 = vmax.f32 %v87_v13, %v88_v16 }
  0x19   :  { %109 = vst [vmem:[#allocation2 + $0x4] sm:$0x3] %v101_v17 }
  0x1a   :  { %v102_v19 = vsel %vm98_vm1, %v89_v18, %v82_v15 }
  0x1b   :  { %110 = vst [vmem:[#allocation2 + $0x6] sm:$0x3] %v102_v19 }
  0x1c   :  { %141 = shalt.err (!%p138_p4)
}
  0x1d   :  { %s153_s11 = smov 32   ;;  %s154_s12 = smov 2  }
  0x1e   :  { %122 = dma.vmem_to_hbm [thread:$0]  %s117_s9, 128, %s229_s1, [#allocation3], %s153_s11, %s153_s11, %s154_s12  }
  0x1f   :  { %150 = dma.done.wait [#allocation3], 128  }
  0x20   :  { %151 = vsyncadd [#allocation3], 4294967168 }
  0x21   :  { %126 = vsyncpa [#allocation3], 1 }

// kernel: high_resolution_branch.15
= control target key start
LH: loop header
LB: loop body
LE: loop exit
PB: predicated region body
PF: predicated region fallthrough
CT: control target
= control target key end

     0   :  { %s1632_s1 = inlined_call_operand.vmem [shape: bf16[1152,128], index: 1, kind: input, shape index: {}]   ;;  %s1633_s0 = inlined_call_operand.vmem [shape: bf16[32,1152], index: 0, kind: input, shape index: {}]   ;;  %s1634_s2 = inlined_call_operand.vmem [shape: f32[1,128], index: 2, kind: input, shape index: {}]   ;;  %s1635_s3 = inlined_call_operand.vmem [shape: bf16[32,128], index: 3, kind: output, shape index: {}]  }
   0x1   :  { %v1235_v0 = vld [vmem:[%s1632_s1 + $0x78] sm:$0xff]   ;;  %v1239_v4 = vld [vmem:[%s1632_s1 + $0x70] sm:$0xff]   ;;  %v1243_v8 = vld [vmem:[%s1632_s1 + $0x68] sm:$0xff]  }
   0x2   :  { %v1236_v1 = vld [vmem:[%s1632_s1 + $0x38] sm:$0xff]   ;;  %1093 = vmatprep.subr.bf16.mxu0 %v1235_v0  ;;  %v1240_v5 = vld [vmem:[%s1632_s1 + $0x30] sm:$0xff]   ;;  %v1244_v9 = vld [vmem:[%s1632_s1 + $0x28] sm:$0xff]  }
   0x3   :  { %v1237_v2 = vld [vmem:[%s1632_s1 + $0xf8] sm:$0xff]   ;;  %1094 = vmatpush3.bf16.msra.mxu0 %v1236_v1  ;;  %v1241_v6 = vld [vmem:[%s1632_s1 + $0xf0] sm:$0xff]   ;;  %v1245_v10 = vld [vmem:[%s1632_s1 + $0xe8] sm:$0xff]  }
   0x4   :  { %v1238_v3 = vld [vmem:[%s1632_s1 + $0xb8] sm:$0xff]   ;;  %1121 = vmatprep.subr.bf16.mxu1 %v1237_v2  ;;  %1095 = vmatprep.subr.bf16.mxu0 %v1239_v4  ;;  %v1242_v7 = vld [vmem:[%s1632_s1 + $0xb0] sm:$0xff]   ;;  %v1246_v11 = vld [vmem:[%s1632_s1 + $0xa8] sm:$0xff]  }
   0x5   :  { %1122 = vmatpush3.bf16.msra.mxu1 %v1238_v3  ;;  %v1247_v12 = vld [vmem:[%s1632_s1 + $0x60] sm:$0xff]   ;;  %v1251_v16 = vld [vmem:[%s1632_s1 + $0x58] sm:$0xff]   ;;  %v1255_v20 = vld [vmem:[%s1632_s1 + $0x50] sm:$0xff]  }
   0x6   :  { %1123 = vmatprep.subr.bf16.mxu1 %v1241_v6  ;;  %v1248_v13 = vld [vmem:[%s1632_s1 + $0x20] sm:$0xff]   ;;  %v1252_v17 = vld [vmem:[%s1632_s1 + $0x18] sm:$0xff]   ;;  %v1256_v21 = vld [vmem:[%s1632_s1 + $0x10] sm:$0xff]  }
   0x7   :  { %1096 = vmatpush3.bf16.msra.mxu0 %v1240_v5  ;;  %v1249_v14 = vld [vmem:[%s1632_s1 + $0xe0] sm:$0xff]   ;;  %v1253_v18 = vld [vmem:[%s1632_s1 + $0xd8] sm:$0xff]   ;;  %v1257_v22 = vld [vmem:[%s1632_s1 + $0xd0] sm:$0xff]  }
   0x8   :  { %1097 = vmatprep.subr.bf16.mxu0 %v1243_v8  ;;  %v1250_v15 = vld [vmem:[%s1632_s1 + $0xa0] sm:$0xff]   ;;  %v1254_v19 = vld [vmem:[%s1632_s1 + $0x98] sm:$0xff]   ;;  %v1258_v23 = vld [vmem:[%s1632_s1 + $0x90] sm:$0xff]  }
   0x9   :  { %1124 = vmatpush3.bf16.msra.mxu1 %v1242_v7  ;;  %v1259_v24 = vld [vmem:[%s1632_s1 + $0x48] sm:$0xff]   ;;  %v1263_v28 = vld [vmem:[%s1632_s1 + $0x40] sm:$0xff]   ;;  %v1270_v34 = vld [vmem:[%s1632_s1 + $0x178] sm:$0xff]  }
   0xa   :  { %1125 = vmatprep.subr.bf16.mxu1 %v1245_v10  ;;  %v1260_v25 = vld [vmem:[%s1632_s1 + $0x8] sm:$0xff]   ;;  %v1264_v29 = vld [vmem:[%s1632_s1] sm:$0xff]   ;;  %v1274_v37 = vld [vmem:[%s1632_s1 + $0x138] sm:$0xff]  }
   0xb   :  { %1098 = vmatpush3.bf16.msra.mxu0 %v1244_v9  ;;  %v1261_v26 = vld [vmem:[%s1632_s1 + $0xc8] sm:$0xff]   ;;  %v1265_v30 = vld [vmem:[%s1632_s1 + $0xc0] sm:$0xff]   ;;  %v1275_v38 = vld [vmem:[%s1632_s1 + $0x1f8] sm:$0xff]  }
   0xc   :  { %1099 = vmatprep.subr.bf16.mxu0 %v1247_v12  ;;  %v1262_v27 = vld [vmem:[%s1632_s1 + $0x88] sm:$0xff]   ;;  %v1266_v31 = vld [vmem:[%s1633_s0] ss:$36 sps:$4 sm:$0xff]   ;;  %v1276_v39 = vld [vmem:[%s1632_s1 + $0x1b8] sm:$0xff]  }
   0xd   :  { %1126 = vmatpush3.bf16.msra.mxu1 %v1246_v11  ;;  %v1268_v32 = vld [vmem:[%s1633_s0 + $0x4] ss:$36 sps:$4 sm:$0xff]   ;;  %v1273_v36 = vld [vmem:[%s1633_s0 + $0xc] ss:$36 sps:$4 sm:$0xff]   ;;  %v1289_v52 = vld [vmem:[%s1632_s1 + $0x158] sm:$0xff]  }
   0xe   :  { %1127 = vmatprep.subr.bf16.mxu1 %v1249_v14  ;;  %v1269_v33 = vld [vmem:[%s1632_s1 + $0x80] sm:$0xff]   ;;  %742 = vmatprep.mubr.bf16.mxu0 %v1268_v32  ;;  %v1271_v35 = vld [vmem:[%s1633_s0 + $0x8] ss:$36 sps:$4 sm:$0xff]   ;;  %v1277_v40 = vld [vmem:[%s1632_s1 + $0x170] sm:$0xff]  }
   0xf   :  { %1100 = vmatpush3.bf16.msra.mxu0 %v1248_v13  ;;  %791 = vmatprep.mubr.bf16.mxu1 %v1273_v36  ;;  %v1278_v41 = vld [vmem:[%s1632_s1 + $0x130] sm:$0xff]   ;;  %v1281_v44 = vld [vmem:[%s1632_s1 + $0x168] sm:$0xff]   ;;  %v1285_v48 = vld [vmem:[%s1632_s1 + $0x160] sm:$0xff]  }
  0x10   :  { %1101 = vmatprep.subr.bf16.mxu0 %v1251_v16  ;;  %v1279_v42 = vld [vmem:[%s1632_s1 + $0x1f0] sm:$0xff]   ;;  %v1282_v45 = vld [vmem:[%s1632_s1 + $0x128] sm:$0xff]   ;;  %v1286_v49 = vld [vmem:[%s1632_s1 + $0x120] sm:$0xff]  }
  0x11   :  { %1128 = vmatpush3.bf16.msra.mxu1 %v1250_v15  ;;  %v1280_v43 = vld [vmem:[%s1632_s1 + $0x1b0] sm:$0xff]   ;;  %v1283_v46 = vld [vmem:[%s1632_s1 + $0x1e8] sm:$0xff]   ;;  %v1287_v50 = vld [vmem:[%s1632_s1 + $0x1e0] sm:$0xff]  }
  0x12   :  { %1129 = vmatprep.subr.bf16.mxu1 %v1253_v18  ;;  %v1284_v47 = vld [vmem:[%s1632_s1 + $0x1a8] sm:$0xff]   ;;  %v1288_v51 = vld [vmem:[%s1632_s1 + $0x1a0] sm:$0xff]   ;;  %v1290_v53 = vld [vmem:[%s1632_s1 + $0x118] sm:$0xff]  }
  0x13   :  { %1102 = vmatpush3.bf16.msra.mxu0 %v1252_v17  ;;  %v1291_v54 = vld [vmem:[%s1633_s0 + $0x4c] ss:$36 sps:$4 sm:$0xff]   ;;  %v1293_v55 = vld [vmem:[%s1632_s1 + $0x1d8] sm:$0xff]   ;;  %v1307_v4 = vld [vmem:[%s1632_s1 + $0x140] sm:$0xff]  }
  0x14   :  { %1103 = vmatprep.subr.bf16.mxu0 %v1255_v20  ;;  %v1294_v56 = vld [vmem:[%s1633_s0 + $0x48] ss:$36 sps:$4 sm:$0xff]   ;;  %v1295_v57 = vld [vmem:[%s1632_s1 + $0x198] sm:$0xff]   ;;  %v1298_v59 = vld [vmem:[%s1632_s1 + $0x150] sm:$0xff]  }
  0x15   :  { %1130 = vmatpush3.bf16.msra.mxu1 %v1254_v19  ;;  %v1296_v58 = vld [vmem:[%s1633_s0 + $0x54] ss:$36 sps:$4 sm:$0xff]   ;;  %v1303_v0 = vld [vmem:[%s1632_s1 + $0x148] sm:$0xff]   ;;  %v1308_v5 = vld [vmem:[%s1632_s1 + $0x100] sm:$0xff]  }
  0x16   :  { %1131 = vmatprep.subr.bf16.mxu1 %v1257_v22  ;;  %v1299_v60 = vld [vmem:[%s1633_s0 + $0x50] ss:$36 sps:$4 sm:$0xff]   ;;  %v1304_v1 = vld [vmem:[%s1632_s1 + $0x108] sm:$0xff]   ;;  %v1309_v6 = vld [vmem:[%s1632_s1 + $0x1c0] sm:$0xff]  }
  0x17   :  { %1104 = vmatpush3.bf16.msra.mxu0 %v1256_v21  ;;  %v1300_v61 = vld [vmem:[%s1632_s1 + $0x110] sm:$0xff]   ;;  %v1305_v2 = vld [vmem:[%s1632_s1 + $0x1c8] sm:$0xff]   ;;  %v1313_v9 = vld [vmem:[%s1632_s1 + $0x180] sm:$0xff]  }
  0x18   :  { %1105 = vmatprep.subr.bf16.mxu0 %v1259_v24  ;;  %v1301_v62 = vld [vmem:[%s1632_s1 + $0x1d0] sm:$0xff]   ;;  %v1306_v3 = vld [vmem:[%s1632_s1 + $0x188] sm:$0xff]   ;;  %v1314_v10 = vld [vmem:[%s1632_s1 + $0x238] sm:$0xff]  }
  0x19   :  { %1132 = vmatpush3.bf16.msra.mxu1 %v1258_v23  ;;  %v1302_v63 = vld [vmem:[%s1632_s1 + $0x190] sm:$0xff]   ;;  %v1315_v11 = vld [vmem:[%s1633_s0 + $0x18] ss:$36 sps:$4 sm:$0xff]   ;;  %v1322_v16 = vld [vmem:[%s1632_s1 + $0x228] sm:$0xff]  }
  0x1a   :  { %1133 = vmatprep.subr.bf16.mxu1 %v1261_v26  ;;  %v1310_v7 = vld [vmem:[%s1633_s0 + $0x10] ss:$36 sps:$4 sm:$0xff]   ;;  %v1317_v12 = vld [vmem:[%s1633_s0 + $0x1c] ss:$36 sps:$4 sm:$0xff]   ;;  %v1323_v17 = vld [vmem:[%s1633_s0 + $0x64] ss:$36 sps:$4 sm:$0xff]  }
  0x1b   :  { %1106 = vmatpush3.bf16.msra.mxu0 %v1260_v25  ;;  %v1312_v8 = vld [vmem:[%s1633_s0 + $0x14] ss:$36 sps:$4 sm:$0xff]   ;;  %v1319_v14 = vld [vmem:[%s1633_s0 + $0x5c] ss:$36 sps:$4 sm:$0xff]   ;;  %v1329_v23 = vld [vmem:[%s1632_s1 + $0x208] sm:$0xff]  }
  0x1c   :  { %1107 = vmatprep.subr.bf16.mxu0 %v1263_v28  ;;  %v1318_v13 = vld [vmem:[%s1632_s1 + $0x230] sm:$0xff]   ;;  %v1321_v15 = vld [vmem:[%s1633_s0 + $0x58] ss:$36 sps:$4 sm:$0xff]   ;;  %v1325_v18 = vld [vmem:[%s1633_s0 + $0x60] ss:$36 sps:$4 sm:$0xff]  }
  0x1d   :  { %1134 = vmatpush3.bf16.msra.mxu1 %v1262_v27  ;;  %v1326_v19 = vld [vmem:[%s1632_s1 + $0x220] sm:$0xff]   ;;  %v1327_v20 = vld [vmem:[%s1632_s1 + $0x218] sm:$0xff]   ;;  %v1328_v22 = vld [vmem:[%s1632_s1 + $0x210] sm:$0xff]  }
  0x1e   :  { %1135 = vmatprep.subr.bf16.mxu1 %v1265_v30  ;;  %v1331_v21 = vld [vmem:[%s1633_s0 + $0x20] ss:$36 sps:$4 sm:$0xff]   ;;  %v1332_v25 = vld [vmem:[%s1633_s0 + $0x68] ss:$36 sps:$4 sm:$0xff]  }
  0x1f   :  { %1108 = vmatpush3.bf16.msra.mxu0 %v1264_v29  ;;  %v1330_v24 = vld [vmem:[%s1632_s1 + $0x200] sm:$0xff]  }
  0x20   :  { %1149 = vmatprep.subr.bf16.mxu0 %v1270_v34 }
  0x21   :  { %1136 = vmatpush3.bf16.msra.mxu1 %v1269_v33 }
  0x22   :  { %743 = vmatmul.mubr.bf16.vlgmr.msra.gmra.mxu0 %v1266_v31  ;;  %1177 = vmatprep.subr.bf16.mxu1 %v1275_v38 }
  0x23   :  { %1150 = vmatpush3.bf16.msra.mxu0 %v1274_v37  ;;  %750 = vmatprep.mubr.bf16.mxu0 %v1291_v54 }
  0x24   :  { %792 = vmatmul.mubr.bf16.vlgmr.msra.gmra.mxu1 %v1271_v35  ;;  %1151 = vmatprep.subr.bf16.mxu0 %v1277_v40 }
  0x25   :  { %1178 = vmatpush3.bf16.msra.mxu1 %v1276_v39  ;;  %799 = vmatprep.mubr.bf16.mxu1 %v1296_v58 }
  0x26   :  { %1179 = vmatprep.subr.bf16.mxu1 %v1279_v42 }
  0x27   :  { %1152 = vmatpush3.bf16.msra.mxu0 %v1278_v41 }
  0x28   :  { %1153 = vmatprep.subr.bf16.mxu0 %v1281_v44 }
  0x29   :  { %1180 = vmatpush3.bf16.msra.mxu1 %v1280_v43 }
  0x2a   :  { %1181 = vmatprep.subr.bf16.mxu1 %v1283_v46  ;;  %751 = vmatmul.mubr.bf16.gmra.mxu0 %v1294_v56 }
  0x2b   :  { %1154 = vmatpush3.bf16.msra.mxu0 %v1282_v45  ;;  %840 = vmatprep.mubr.bf16.mxu0 %v1312_v8 }
  0x2c   :  { %1155 = vmatprep.subr.bf16.mxu0 %v1285_v48  ;;  %800 = vmatmul.mubr.bf16.gmra.mxu1 %v1299_v60 }
  0x2d   :  { %1182 = vmatpush3.bf16.msra.mxu1 %v1284_v47  ;;  %889 = vmatprep.mubr.bf16.mxu1 %v1317_v12 }
  0x2e   :  { %1183 = vmatprep.subr.bf16.mxu1 %v1287_v50 }
  0x2f   :  { %1156 = vmatpush3.bf16.msra.mxu0 %v1286_v49 }
  0x30   :  { %1157 = vmatprep.subr.bf16.mxu0 %v1289_v52 }
  0x31   :  { %1184 = vmatpush3.bf16.msra.mxu1 %v1288_v51 }
  0x32   :  { %1185 = vmatprep.subr.bf16.mxu1 %v1293_v55 }
  0x33   :  { %1158 = vmatpush3.bf16.msra.mxu0 %v1290_v53 }
  0x34   :  { %1159 = vmatprep.subr.bf16.mxu0 %v1298_v59 }
  0x35   :  { %1186 = vmatpush3.bf16.msra.mxu1 %v1295_v57  ;;  %v983_v57 = vld [vmem:[%s1634_s2] ss:$0 sm:$0xff] }
  0x36   :  { %1187 = vmatprep.subr.bf16.mxu1 %v1301_v62 }
  0x37   :  { %1160 = vmatpush3.bf16.msra.mxu0 %v1300_v61 }
  0x38   :  { %1161 = vmatprep.subr.bf16.mxu0 %v1303_v0 }
  0x39   :  { %1188 = vmatpush3.bf16.msra.mxu1 %v1302_v63 }
  0x3a   :  { %1189 = vmatprep.subr.bf16.mxu1 %v1305_v2 }
  0x3b   :  { %1162 = vmatpush3.bf16.msra.mxu0 %v1304_v1 }
  0x3c   :  { %1163 = vmatprep.subr.bf16.mxu0 %v1307_v4 }
  0x3d   :  { %1190 = vmatpush3.bf16.msra.mxu1 %v1306_v3 }
  0x3e   :  { %1191 = vmatprep.subr.bf16.mxu1 %v1309_v6 }
  0x3f   :  { %1164 = vmatpush3.bf16.msra.mxu0 %v1308_v5 }
  0x40   :  { %1215 = vmatprep.subr.bf16.mxu0 %v1314_v10 }
  0x41   :  { %1192 = vmatpush3.bf16.msra.mxu1 %v1313_v9 }
  0x42   :  { %841 = vmatmul.mubr.bf16.vlgmr.msra.gmra.mxu0 %v1310_v7 }
  0x43   :  { %1216 = vmatpush3.bf16.msra.mxu0 %v1314_v10  ;;  %848 = vmatprep.mubr.bf16.mxu0 %v1319_v14 }
  0x44   :  { %890 = vmatmul.mubr.bf16.vlgmr.msra.gmra.mxu1 %v1315_v11  ;;  %1217 = vmatprep.subr.bf16.mxu0 %v1318_v13 }
  0x45   :  { %897 = vmatprep.mubr.bf16.mxu1 %v1323_v17 }
  0x47   :  { %1218 = vmatpush3.bf16.msra.mxu0 %v1318_v13 }
  0x48   :  { %1219 = vmatprep.subr.bf16.mxu0 %v1322_v16 }
  0x4a   :  { %849 = vmatmul.mubr.bf16.gmra.mxu0 %v1321_v15 }
  0x4b   :  { %1220 = vmatpush3.bf16.msra.mxu0 %v1322_v16  ;;  %1231 = vmatprep.mubr.bf16.mxu0 %v1331_v21 }
  0x4c   :  { %898 = vmatmul.mubr.bf16.gmra.mxu1 %v1325_v18  ;;  %1221 = vmatprep.subr.bf16.mxu0 %v1326_v19 }
  0x4f   :  { %1222 = vmatpush3.bf16.msra.mxu0 %v1326_v19 }
  0x50   :  { %1223 = vmatprep.subr.bf16.mxu0 %v1327_v20 }
  0x53   :  { %1224 = vmatpush3.bf16.msra.mxu0 %v1327_v20 }
  0x54   :  { %1225 = vmatprep.subr.bf16.mxu0 %v1328_v22 }
  0x57   :  { %1226 = vmatpush3.bf16.msra.mxu0 %v1328_v22 }
  0x58   :  { %1227 = vmatprep.subr.bf16.mxu0 %v1329_v23 }
  0x5b   :  { %1228 = vmatpush3.bf16.msra.mxu0 %v1329_v23 }
  0x5c   :  { %1229 = vmatprep.subr.bf16.mxu0 %v1330_v24 }
  0x5f   :  { %1230 = vmatpush3.bf16.msra.mxu0 %v1330_v24 }
  0x62   :  { %1232 = vmatmul.mubr.bf16.vlgmr.msra.gmra.mxu0 %v1332_v25 }
  0xe2   :  { %v1109_v26 = vpop.f32.mrf.mxu0 }
  0xe4   :  { %v1137_v27 = vpop.f32.mrf.mxu1  ;;  %v1110_v28 = vpop.f32.mrf.mxu0 }
  0xe5   :  { %v1111_v54 = vadd.f32 %v1110_v28, %v1109_v26 }
  0xe6   :  { %v1138_v29 = vpop.f32.mrf.mxu1  ;;  %v1112_v30 = vpop.f32.mrf.mxu0 }
  0xe7   :  { %v745_v62 = vadd.f32 %v1111_v54, %v983_v57  ;;  %v1139_v63 = vadd.f32 %v1138_v29, %v1137_v27 }
  0xe8   :  { %v1140_v31 = vpop.f32.mrf.mxu1  ;;  %v1113_v32 = vpop.f32.mrf.mxu0 }
  0xe9   :  { %v1114_v59 = vadd.f32 %v1113_v32, %v1112_v30  ;;  %v794_v10 = vadd.f32 %v1139_v63, %v745_v62 }
  0xea   :  { %v1115_v33 = vpop.f32.mrf.mxu0  ;;  %v1141_v34 = vpop.f32.mrf.mxu1 }
  0xeb   :  { %v748_v5 = vadd.f32 %v1114_v59, %v983_v57  ;;  %v1142_v6 = vadd.f32 %v1141_v34, %v1140_v31 }
  0xec   :  { %v1143_v35 = vpop.f32.mrf.mxu1  ;;  %v1116_v36 = vpop.f32.mrf.mxu0 }
  0xed   :  { %v1117_v53 = vadd.f32 %v1116_v36, %v1115_v33  ;;  %v797_v16 = vadd.f32 %v1142_v6, %v748_v5 }
  0xee   :  { %v1144_v37 = vpop.f32.mrf.mxu1  ;;  %v1118_v38 = vpop.f32.mrf.mxu0 }
  0xef   :  { %v753_v60 = vadd.f32 %v1117_v53, %v983_v57  ;;  %v1145_v61 = vadd.f32 %v1144_v37, %v1143_v35 }
  0xf0   :  { %v1146_v39 = vpop.f32.mrf.mxu1  ;;  %v1119_v40 = vpop.f32.mrf.mxu0 }
  0xf1   :  { %v1120_v58 = vadd.f32 %v1119_v40, %v1118_v38  ;;  %v802_v7 = vadd.f32 %v1145_v61, %v753_v60 }
  0xf2   :  { %v1147_v42 = vpop.f32.mrf.mxu1 }
  0xf3   :  { %v756_v2 = vadd.f32 %v1120_v58, %v983_v57  ;;  %v1148_v3 = vadd.f32 %v1147_v42, %v1146_v39 }
  0xf5   :  { %v805_v12 = vadd.f32 %v1148_v3, %v756_v2 }
 0x102   :  { %v1165_v41 = vpop.f32.mrf.mxu0 }
 0x104   :  { %v1166_v43 = vpop.f32.mrf.mxu0  ;;  %v1193_v44 = vpop.f32.mrf.mxu1 }
 0x105   :  { %v1167_v8 = vadd.f32 %v1166_v43, %v1165_v41 }
 0x106   :  { %v1168_v45 = vpop.f32.mrf.mxu0  ;;  %v1194_v46 = vpop.f32.mrf.mxu1 }
 0x107   :  { %v843_v17 = vadd.f32 %v1167_v8, %v794_v10  ;;  %v1195_v18 = vadd.f32 %v1194_v46, %v1193_v44 }
 0x108   :  { %v1169_v47 = vpop.f32.mrf.mxu0  ;;  %v1196_v48 = vpop.f32.mrf.mxu1 }
 0x109   :  { %v1170_v13 = vadd.f32 %v1169_v47, %v1168_v45  ;;  %v892_v27 = vadd.f32 %v1195_v18, %v843_v17 }
 0x10a   :  { %v1171_v49 = vpop.f32.mrf.mxu0  ;;  %v1197_v50 = vpop.f32.mrf.mxu1 }
 0x10b   :  { %v846_v22 = vadd.f32 %v1170_v13, %v797_v16  ;;  %v1198_v23 = vadd.f32 %v1197_v50, %v1196_v48 }
 0x10c   :  { %v1172_v51 = vpop.f32.mrf.mxu0  ;;  %v1199_v52 = vpop.f32.mrf.mxu1 }
 0x10d   :  { %v1173_v4 = vadd.f32 %v1172_v51, %v1171_v49  ;;  %v895_v32 = vadd.f32 %v1198_v23, %v846_v22 }
 0x10e   :  { %v1174_v55 = vpop.f32.mrf.mxu0  ;;  %v1200_v56 = vpop.f32.mrf.mxu1 }
 0x10f   :  { %v851_v14 = vadd.f32 %v1173_v4, %v802_v7  ;;  %v1201_v15 = vadd.f32 %v1200_v56, %v1199_v52 }
 0x110   :  { %v1175_v0 = vpop.f32.mrf.mxu0  ;;  %v1202_v1 = vpop.f32.mrf.mxu1 }
 0x111   :  { %v1176_v9 = vadd.f32 %v1175_v0, %v1174_v55  ;;  %v900_v24 = vadd.f32 %v1201_v15, %v851_v14 }
 0x112   :  { %v1203_v11 = vpop.f32.mrf.mxu1 }
 0x113   :  { %v854_v19 = vadd.f32 %v1176_v9, %v805_v12  ;;  %v1204_v20 = vadd.f32 %v1203_v11, %v1202_v1 }
 0x115   :  { %v903_v28 = vadd.f32 %v1204_v20, %v854_v19 }
 0x122   :  { %v1233_v21 = vpop.f32.mrf.mxu0 }
 0x123   :  { %v949_v26 = vadd.f32 %v1233_v21, %v900_v24 }
 0x124   :  { %v940_v25 = vpop.f32.mrf.mxu0 }
 0x125   :  { %v941_v30 = vadd.f32 %v940_v25, %v892_v27  ;;  %v957_v34 = vmax.f32 %v949_v26, 0.0 }
 0x126   :  { %v1234_v29 = vpop.f32.mrf.mxu0 }
 0x127   :  { %v952_v31 = vadd.f32 %v1234_v29, %v903_v28  ;;  %v955_v37 = vmax.f32 %v941_v30, 0.0 }
 0x128   :  { %v943_v33 = vpop.f32.mrf.mxu0 }
 0x129   :  { %v958_v35 = vmax.f32 %v952_v31, 0.0  ;;  %v944_v36 = vadd.f32 %v943_v33, %v895_v32 }
 0x12b   :  { %v1090_v38 = vpack.c.bf16 %v958_v35, %v957_v34  ;;  %v956_v39 = vmax.f32 %v944_v36, 0.0 }
 0x12d   :  { %1092 = vst [vmem:[%s1635_s3 + $0x8] sm:$0xff] %v1090_v38   ;;  %v1085_v40 = vpack.c.bf16 %v956_v39, %v955_v37 }
 0x12f   :  { %1086 = vst [vmem:[%s1635_s3] sm:$0xff] %v1085_v40  }

// kernel: high_resolution_branch.16
= control target key start
LH: loop header
LB: loop body
LE: loop exit
PB: predicated region body
PF: predicated region fallthrough
CT: control target
= control target key end

     0   :  { %s1603_s1 = inlined_call_operand.vmem [shape: bf16[1152,128], index: 1, kind: input, shape index: {}]   ;;  %s1604_s0 = inlined_call_operand.vmem [shape: bf16[32,1152], index: 0, kind: input, shape index: {}]   ;;  %s1605_s2 = inlined_call_operand.vmem [shape: f32[1,128], index: 2, kind: input, shape index: {}]   ;;  %s1606_s3 = inlined_call_operand.vmem [shape: f32[32,128], index: 3, kind: output, shape index: {}]  }
   0x1   :  { %v1200_v0 = vld [vmem:[%s1603_s1 + $0x78] sm:$0xff]   ;;  %v1204_v4 = vld [vmem:[%s1603_s1 + $0x70] sm:$0xff]   ;;  %v1208_v8 = vld [vmem:[%s1603_s1 + $0x68] sm:$0xff]  }
   0x2   :  { %v1201_v1 = vld [vmem:[%s1603_s1 + $0x38] sm:$0xff]   ;;  %1058 = vmatprep.subr.bf16.mxu0 %v1200_v0  ;;  %v1205_v5 = vld [vmem:[%s1603_s1 + $0x30] sm:$0xff]   ;;  %v1209_v9 = vld [vmem:[%s1603_s1 + $0x28] sm:$0xff]  }
   0x3   :  { %v1202_v2 = vld [vmem:[%s1603_s1 + $0xf8] sm:$0xff]   ;;  %1059 = vmatpush3.bf16.msra.mxu0 %v1201_v1  ;;  %v1206_v6 = vld [vmem:[%s1603_s1 + $0xf0] sm:$0xff]   ;;  %v1210_v10 = vld [vmem:[%s1603_s1 + $0xe8] sm:$0xff]  }
   0x4   :  { %v1203_v3 = vld [vmem:[%s1603_s1 + $0xb8] sm:$0xff]   ;;  %1086 = vmatprep.subr.bf16.mxu1 %v1202_v2  ;;  %1060 = vmatprep.subr.bf16.mxu0 %v1204_v4  ;;  %v1207_v7 = vld [vmem:[%s1603_s1 + $0xb0] sm:$0xff]   ;;  %v1211_v11 = vld [vmem:[%s1603_s1 + $0xa8] sm:$0xff]  }
   0x5   :  { %1087 = vmatpush3.bf16.msra.mxu1 %v1203_v3  ;;  %v1212_v12 = vld [vmem:[%s1603_s1 + $0x60] sm:$0xff]   ;;  %v1216_v16 = vld [vmem:[%s1603_s1 + $0x58] sm:$0xff]   ;;  %v1220_v20 = vld [vmem:[%s1603_s1 + $0x50] sm:$0xff]  }
   0x6   :  { %1088 = vmatprep.subr.bf16.mxu1 %v1206_v6  ;;  %v1213_v13 = vld [vmem:[%s1603_s1 + $0x20] sm:$0xff]   ;;  %v1217_v17 = vld [vmem:[%s1603_s1 + $0x18] sm:$0xff]   ;;  %v1221_v21 = vld [vmem:[%s1603_s1 + $0x10] sm:$0xff]  }
   0x7   :  { %1061 = vmatpush3.bf16.msra.mxu0 %v1205_v5  ;;  %v1214_v14 = vld [vmem:[%s1603_s1 + $0xe0] sm:$0xff]   ;;  %v1218_v18 = vld [vmem:[%s1603_s1 + $0xd8] sm:$0xff]   ;;  %v1222_v22 = vld [vmem:[%s1603_s1 + $0xd0] sm:$0xff]  }
   0x8   :  { %1062 = vmatprep.subr.bf16.mxu0 %v1208_v8  ;;  %v1215_v15 = vld [vmem:[%s1603_s1 + $0xa0] sm:$0xff]   ;;  %v1219_v19 = vld [vmem:[%s1603_s1 + $0x98] sm:$0xff]   ;;  %v1223_v23 = vld [vmem:[%s1603_s1 + $0x90] sm:$0xff]  }
   0x9   :  { %1089 = vmatpush3.bf16.msra.mxu1 %v1207_v7  ;;  %v1224_v24 = vld [vmem:[%s1603_s1 + $0x48] sm:$0xff]   ;;  %v1228_v28 = vld [vmem:[%s1603_s1 + $0x40] sm:$0xff]   ;;  %v1235_v34 = vld [vmem:[%s1603_s1 + $0x178] sm:$0xff]  }
   0xa   :  { %1090 = vmatprep.subr.bf16.mxu1 %v1210_v10  ;;  %v1225_v25 = vld [vmem:[%s1603_s1 + $0x8] sm:$0xff]   ;;  %v1229_v29 = vld [vmem:[%s1603_s1] sm:$0xff]   ;;  %v1239_v37 = vld [vmem:[%s1603_s1 + $0x138] sm:$0xff]  }
   0xb   :  { %1063 = vmatpush3.bf16.msra.mxu0 %v1209_v9  ;;  %v1226_v26 = vld [vmem:[%s1603_s1 + $0xc8] sm:$0xff]   ;;  %v1230_v30 = vld [vmem:[%s1603_s1 + $0xc0] sm:$0xff]   ;;  %v1240_v38 = vld [vmem:[%s1603_s1 + $0x1f8] sm:$0xff]  }
   0xc   :  { %1064 = vmatprep.subr.bf16.mxu0 %v1212_v12  ;;  %v1227_v27 = vld [vmem:[%s1603_s1 + $0x88] sm:$0xff]   ;;  %v1231_v31 = vld [vmem:[%s1604_s0] ss:$36 sps:$4 sm:$0xff]   ;;  %v1241_v39 = vld [vmem:[%s1603_s1 + $0x1b8] sm:$0xff]  }
   0xd   :  { %1091 = vmatpush3.bf16.msra.mxu1 %v1211_v11  ;;  %v1233_v32 = vld [vmem:[%s1604_s0 + $0x4] ss:$36 sps:$4 sm:$0xff]   ;;  %v1238_v36 = vld [vmem:[%s1604_s0 + $0xc] ss:$36 sps:$4 sm:$0xff]   ;;  %v1254_v52 = vld [vmem:[%s1603_s1 + $0x158] sm:$0xff]  }
   0xe   :  { %1092 = vmatprep.subr.bf16.mxu1 %v1214_v14  ;;  %v1234_v33 = vld [vmem:[%s1603_s1 + $0x80] sm:$0xff]   ;;  %742 = vmatprep.mubr.bf16.mxu0 %v1233_v32  ;;  %v1236_v35 = vld [vmem:[%s1604_s0 + $0x8] ss:$36 sps:$4 sm:$0xff]   ;;  %v1242_v40 = vld [vmem:[%s1603_s1 + $0x170] sm:$0xff]  }
   0xf   :  { %1065 = vmatpush3.bf16.msra.mxu0 %v1213_v13  ;;  %791 = vmatprep.mubr.bf16.mxu1 %v1238_v36  ;;  %v1243_v41 = vld [vmem:[%s1603_s1 + $0x130] sm:$0xff]   ;;  %v1246_v44 = vld [vmem:[%s1603_s1 + $0x168] sm:$0xff]   ;;  %v1250_v48 = vld [vmem:[%s1603_s1 + $0x160] sm:$0xff]  }
  0x10   :  { %1066 = vmatprep.subr.bf16.mxu0 %v1216_v16  ;;  %v1244_v42 = vld [vmem:[%s1603_s1 + $0x1f0] sm:$0xff]   ;;  %v1247_v45 = vld [vmem:[%s1603_s1 + $0x128] sm:$0xff]   ;;  %v1251_v49 = vld [vmem:[%s1603_s1 + $0x120] sm:$0xff]  }
  0x11   :  { %1093 = vmatpush3.bf16.msra.mxu1 %v1215_v15  ;;  %v1245_v43 = vld [vmem:[%s1603_s1 + $0x1b0] sm:$0xff]   ;;  %v1248_v46 = vld [vmem:[%s1603_s1 + $0x1e8] sm:$0xff]   ;;  %v1252_v50 = vld [vmem:[%s1603_s1 + $0x1e0] sm:$0xff]  }
  0x12   :  { %1094 = vmatprep.subr.bf16.mxu1 %v1218_v18  ;;  %v1249_v47 = vld [vmem:[%s1603_s1 + $0x1a8] sm:$0xff]   ;;  %v1253_v51 = vld [vmem:[%s1603_s1 + $0x1a0] sm:$0xff]   ;;  %v1255_v53 = vld [vmem:[%s1603_s1 + $0x118] sm:$0xff]  }
  0x13   :  { %1067 = vmatpush3.bf16.msra.mxu0 %v1217_v17  ;;  %v1256_v54 = vld [vmem:[%s1604_s0 + $0x4c] ss:$36 sps:$4 sm:$0xff]   ;;  %v1258_v55 = vld [vmem:[%s1603_s1 + $0x1d8] sm:$0xff]   ;;  %v1272_v4 = vld [vmem:[%s1603_s1 + $0x140] sm:$0xff]  }
  0x14   :  { %1068 = vmatprep.subr.bf16.mxu0 %v1220_v20  ;;  %v1259_v56 = vld [vmem:[%s1604_s0 + $0x48] ss:$36 sps:$4 sm:$0xff]   ;;  %v1260_v57 = vld [vmem:[%s1603_s1 + $0x198] sm:$0xff]   ;;  %v1263_v59 = vld [vmem:[%s1603_s1 + $0x150] sm:$0xff]  }
  0x15   :  { %1095 = vmatpush3.bf16.msra.mxu1 %v1219_v19  ;;  %v1261_v58 = vld [vmem:[%s1604_s0 + $0x54] ss:$36 sps:$4 sm:$0xff]   ;;  %v1268_v0 = vld [vmem:[%s1603_s1 + $0x148] sm:$0xff]   ;;  %v1273_v5 = vld [vmem:[%s1603_s1 + $0x100] sm:$0xff]  }
  0x16   :  { %1096 = vmatprep.subr.bf16.mxu1 %v1222_v22  ;;  %v1264_v60 = vld [vmem:[%s1604_s0 + $0x50] ss:$36 sps:$4 sm:$0xff]   ;;  %v1269_v1 = vld [vmem:[%s1603_s1 + $0x108] sm:$0xff]   ;;  %v1274_v6 = vld [vmem:[%s1603_s1 + $0x1c0] sm:$0xff]  }
  0x17   :  { %1069 = vmatpush3.bf16.msra.mxu0 %v1221_v21  ;;  %v1265_v61 = vld [vmem:[%s1603_s1 + $0x110] sm:$0xff]   ;;  %v1270_v2 = vld [vmem:[%s1603_s1 + $0x1c8] sm:$0xff]   ;;  %v1278_v9 = vld [vmem:[%s1603_s1 + $0x180] sm:$0xff]  }
  0x18   :  { %1070 = vmatprep.subr.bf16.mxu0 %v1224_v24  ;;  %v1266_v62 = vld [vmem:[%s1603_s1 + $0x1d0] sm:$0xff]   ;;  %v1271_v3 = vld [vmem:[%s1603_s1 + $0x188] sm:$0xff]   ;;  %v1279_v10 = vld [vmem:[%s1603_s1 + $0x238] sm:$0xff]  }
  0x19   :  { %1097 = vmatpush3.bf16.msra.mxu1 %v1223_v23  ;;  %v1267_v63 = vld [vmem:[%s1603_s1 + $0x190] sm:$0xff]   ;;  %v1280_v11 = vld [vmem:[%s1604_s0 + $0x18] ss:$36 sps:$4 sm:$0xff]   ;;  %v1287_v16 = vld [vmem:[%s1603_s1 + $0x228] sm:$0xff]  }
  0x1a   :  { %1098 = vmatprep.subr.bf16.mxu1 %v1226_v26  ;;  %v1275_v7 = vld [vmem:[%s1604_s0 + $0x10] ss:$36 sps:$4 sm:$0xff]   ;;  %v1282_v12 = vld [vmem:[%s1604_s0 + $0x1c] ss:$36 sps:$4 sm:$0xff]   ;;  %v1288_v17 = vld [vmem:[%s1604_s0 + $0x64] ss:$36 sps:$4 sm:$0xff]  }
  0x1b   :  { %1071 = vmatpush3.bf16.msra.mxu0 %v1225_v25  ;;  %v1277_v8 = vld [vmem:[%s1604_s0 + $0x14] ss:$36 sps:$4 sm:$0xff]   ;;  %v1284_v14 = vld [vmem:[%s1604_s0 + $0x5c] ss:$36 sps:$4 sm:$0xff]   ;;  %v1294_v23 = vld [vmem:[%s1603_s1 + $0x208] sm:$0xff]  }
  0x1c   :  { %1072 = vmatprep.subr.bf16.mxu0 %v1228_v28  ;;  %v1283_v13 = vld [vmem:[%s1603_s1 + $0x230] sm:$0xff]   ;;  %v1286_v15 = vld [vmem:[%s1604_s0 + $0x58] ss:$36 sps:$4 sm:$0xff]   ;;  %v1290_v18 = vld [vmem:[%s1604_s0 + $0x60] ss:$36 sps:$4 sm:$0xff]  }
  0x1d   :  { %1099 = vmatpush3.bf16.msra.mxu1 %v1227_v27  ;;  %v1291_v19 = vld [vmem:[%s1603_s1 + $0x220] sm:$0xff]   ;;  %v1292_v20 = vld [vmem:[%s1603_s1 + $0x218] sm:$0xff]   ;;  %v1293_v22 = vld [vmem:[%s1603_s1 + $0x210] sm:$0xff]  }
  0x1e   :  { %1100 = vmatprep.subr.bf16.mxu1 %v1230_v30  ;;  %v1296_v21 = vld [vmem:[%s1604_s0 + $0x20] ss:$36 sps:$4 sm:$0xff]   ;;  %v1297_v25 = vld [vmem:[%s1604_s0 + $0x68] ss:$36 sps:$4 sm:$0xff]  }
  0x1f   :  { %1073 = vmatpush3.bf16.msra.mxu0 %v1229_v29  ;;  %v1295_v24 = vld [vmem:[%s1603_s1 + $0x200] sm:$0xff]  }
  0x20   :  { %1114 = vmatprep.subr.bf16.mxu0 %v1235_v34 }
  0x21   :  { %1101 = vmatpush3.bf16.msra.mxu1 %v1234_v33 }
  0x22   :  { %743 = vmatmul.mubr.bf16.vlgmr.msra.gmra.mxu0 %v1231_v31  ;;  %1142 = vmatprep.subr.bf16.mxu1 %v1240_v38 }
  0x23   :  { %1115 = vmatpush3.bf16.msra.mxu0 %v1239_v37  ;;  %750 = vmatprep.mubr.bf16.mxu0 %v1256_v54 }
  0x24   :  { %792 = vmatmul.mubr.bf16.vlgmr.msra.gmra.mxu1 %v1236_v35  ;;  %1116 = vmatprep.subr.bf16.mxu0 %v1242_v40 }
  0x25   :  { %1143 = vmatpush3.bf16.msra.mxu1 %v1241_v39  ;;  %799 = vmatprep.mubr.bf16.mxu1 %v1261_v58 }
  0x26   :  { %1144 = vmatprep.subr.bf16.mxu1 %v1244_v42 }
  0x27   :  { %1117 = vmatpush3.bf16.msra.mxu0 %v1243_v41 }
  0x28   :  { %1118 = vmatprep.subr.bf16.mxu0 %v1246_v44 }
  0x29   :  { %1145 = vmatpush3.bf16.msra.mxu1 %v1245_v43 }
  0x2a   :  { %1146 = vmatprep.subr.bf16.mxu1 %v1248_v46  ;;  %751 = vmatmul.mubr.bf16.gmra.mxu0 %v1259_v56 }
  0x2b   :  { %1119 = vmatpush3.bf16.msra.mxu0 %v1247_v45  ;;  %840 = vmatprep.mubr.bf16.mxu0 %v1277_v8 }
  0x2c   :  { %1120 = vmatprep.subr.bf16.mxu0 %v1250_v48  ;;  %800 = vmatmul.mubr.bf16.gmra.mxu1 %v1264_v60 }
  0x2d   :  { %1147 = vmatpush3.bf16.msra.mxu1 %v1249_v47  ;;  %889 = vmatprep.mubr.bf16.mxu1 %v1282_v12 }
  0x2e   :  { %1148 = vmatprep.subr.bf16.mxu1 %v1252_v50 }
  0x2f   :  { %1121 = vmatpush3.bf16.msra.mxu0 %v1251_v49 }
  0x30   :  { %1122 = vmatprep.subr.bf16.mxu0 %v1254_v52 }
  0x31   :  { %1149 = vmatpush3.bf16.msra.mxu1 %v1253_v51 }
  0x32   :  { %1150 = vmatprep.subr.bf16.mxu1 %v1258_v55  ;;  %v967_v55 = vld [vmem:[%s1605_s2] ss:$0 sm:$0xff] }
  0x33   :  { %1123 = vmatpush3.bf16.msra.mxu0 %v1255_v53 }
  0x34   :  { %1124 = vmatprep.subr.bf16.mxu0 %v1263_v59 }
  0x35   :  { %1151 = vmatpush3.bf16.msra.mxu1 %v1260_v57 }
  0x36   :  { %1152 = vmatprep.subr.bf16.mxu1 %v1266_v62 }
  0x37   :  { %1125 = vmatpush3.bf16.msra.mxu0 %v1265_v61 }
  0x38   :  { %1126 = vmatprep.subr.bf16.mxu0 %v1268_v0 }
  0x39   :  { %1153 = vmatpush3.bf16.msra.mxu1 %v1267_v63 }
  0x3a   :  { %1154 = vmatprep.subr.bf16.mxu1 %v1270_v2 }
  0x3b   :  { %1127 = vmatpush3.bf16.msra.mxu0 %v1269_v1 }
  0x3c   :  { %1128 = vmatprep.subr.bf16.mxu0 %v1272_v4 }
  0x3d   :  { %1155 = vmatpush3.bf16.msra.mxu1 %v1271_v3 }
  0x3e   :  { %1156 = vmatprep.subr.bf16.mxu1 %v1274_v6 }
  0x3f   :  { %1129 = vmatpush3.bf16.msra.mxu0 %v1273_v5 }
  0x40   :  { %1180 = vmatprep.subr.bf16.mxu0 %v1279_v10 }
  0x41   :  { %1157 = vmatpush3.bf16.msra.mxu1 %v1278_v9 }
  0x42   :  { %841 = vmatmul.mubr.bf16.vlgmr.msra.gmra.mxu0 %v1275_v7 }
  0x43   :  { %1181 = vmatpush3.bf16.msra.mxu0 %v1279_v10  ;;  %848 = vmatprep.mubr.bf16.mxu0 %v1284_v14 }
  0x44   :  { %890 = vmatmul.mubr.bf16.vlgmr.msra.gmra.mxu1 %v1280_v11  ;;  %1182 = vmatprep.subr.bf16.mxu0 %v1283_v13 }
  0x45   :  { %897 = vmatprep.mubr.bf16.mxu1 %v1288_v17 }
  0x47   :  { %1183 = vmatpush3.bf16.msra.mxu0 %v1283_v13 }
  0x48   :  { %1184 = vmatprep.subr.bf16.mxu0 %v1287_v16 }
  0x4a   :  { %849 = vmatmul.mubr.bf16.gmra.mxu0 %v1286_v15 }
  0x4b   :  { %1185 = vmatpush3.bf16.msra.mxu0 %v1287_v16  ;;  %1196 = vmatprep.mubr.bf16.mxu0 %v1296_v21 }
  0x4c   :  { %898 = vmatmul.mubr.bf16.gmra.mxu1 %v1290_v18  ;;  %1186 = vmatprep.subr.bf16.mxu0 %v1291_v19 }
  0x4f   :  { %1187 = vmatpush3.bf16.msra.mxu0 %v1291_v19 }
  0x50   :  { %1188 = vmatprep.subr.bf16.mxu0 %v1292_v20 }
  0x53   :  { %1189 = vmatpush3.bf16.msra.mxu0 %v1292_v20 }
  0x54   :  { %1190 = vmatprep.subr.bf16.mxu0 %v1293_v22 }
  0x57   :  { %1191 = vmatpush3.bf16.msra.mxu0 %v1293_v22 }
  0x58   :  { %1192 = vmatprep.subr.bf16.mxu0 %v1294_v23 }
  0x5b   :  { %1193 = vmatpush3.bf16.msra.mxu0 %v1294_v23 }
  0x5c   :  { %1194 = vmatprep.subr.bf16.mxu0 %v1295_v24 }
  0x5f   :  { %1195 = vmatpush3.bf16.msra.mxu0 %v1295_v24 }
  0x62   :  { %1197 = vmatmul.mubr.bf16.vlgmr.msra.gmra.mxu0 %v1297_v25 }
  0xe2   :  { %v1074_v26 = vpop.f32.mrf.mxu0 }
  0xe4   :  { %v1102_v27 = vpop.f32.mrf.mxu1  ;;  %v1075_v28 = vpop.f32.mrf.mxu0 }
  0xe5   :  { %v1076_v54 = vadd.f32 %v1075_v28, %v1074_v26 }
  0xe6   :  { %v1103_v29 = vpop.f32.mrf.mxu1  ;;  %v1077_v30 = vpop.f32.mrf.mxu0 }
  0xe7   :  { %v745_v61 = vadd.f32 %v1076_v54, %v967_v55  ;;  %v1104_v62 = vadd.f32 %v1103_v29, %v1102_v27 }
  0xe8   :  { %v1105_v31 = vpop.f32.mrf.mxu1  ;;  %v1078_v32 = vpop.f32.mrf.mxu0 }
  0xe9   :  { %v1079_v63 = vadd.f32 %v1078_v32, %v1077_v30  ;;  %v794_v7 = vadd.f32 %v1104_v62, %v745_v61 }
  0xea   :  { %v1080_v33 = vpop.f32.mrf.mxu0  ;;  %v1106_v34 = vpop.f32.mrf.mxu1 }
  0xeb   :  { %v748_v8 = vadd.f32 %v1079_v63, %v967_v55  ;;  %v1107_v9 = vadd.f32 %v1106_v34, %v1105_v31 }
  0xec   :  { %v1108_v35 = vpop.f32.mrf.mxu1  ;;  %v1081_v36 = vpop.f32.mrf.mxu0 }
  0xed   :  { %v1082_v53 = vadd.f32 %v1081_v36, %v1080_v33  ;;  %v797_v18 = vadd.f32 %v1107_v9, %v748_v8 }
  0xee   :  { %v1109_v37 = vpop.f32.mrf.mxu1  ;;  %v1083_v38 = vpop.f32.mrf.mxu0 }
  0xef   :  { %v753_v58 = vadd.f32 %v1082_v53, %v967_v55  ;;  %v1110_v59 = vadd.f32 %v1109_v37, %v1108_v35 }
  0xf0   :  { %v1111_v39 = vpop.f32.mrf.mxu1  ;;  %v1084_v40 = vpop.f32.mrf.mxu0 }
  0xf1   :  { %v1085_v60 = vadd.f32 %v1084_v40, %v1083_v38  ;;  %v802_v3 = vadd.f32 %v1110_v59, %v753_v58 }
  0xf2   :  { %v1112_v42 = vpop.f32.mrf.mxu1 }
  0xf3   :  { %v756_v4 = vadd.f32 %v1085_v60, %v967_v55  ;;  %v1113_v5 = vadd.f32 %v1112_v42, %v1111_v39 }
  0xf5   :  { %v805_v14 = vadd.f32 %v1113_v5, %v756_v4 }
 0x102   :  { %v1130_v41 = vpop.f32.mrf.mxu0 }
 0x104   :  { %v1131_v43 = vpop.f32.mrf.mxu0  ;;  %v1158_v44 = vpop.f32.mrf.mxu1 }
 0x105   :  { %v1132_v6 = vadd.f32 %v1131_v43, %v1130_v41 }
 0x106   :  { %v1133_v45 = vpop.f32.mrf.mxu0  ;;  %v1159_v46 = vpop.f32.mrf.mxu1 }
 0x107   :  { %v843_v15 = vadd.f32 %v1132_v6, %v794_v7  ;;  %v1160_v16 = vadd.f32 %v1159_v46, %v1158_v44 }
 0x108   :  { %v1134_v47 = vpop.f32.mrf.mxu0  ;;  %v1161_v48 = vpop.f32.mrf.mxu1 }
 0x109   :  { %v1135_v17 = vadd.f32 %v1134_v47, %v1133_v45  ;;  %v892_v26 = vadd.f32 %v1160_v16, %v843_v15 }
 0x10a   :  { %v1136_v49 = vpop.f32.mrf.mxu0  ;;  %v1162_v50 = vpop.f32.mrf.mxu1 }
 0x10b   :  { %v846_v23 = vadd.f32 %v1135_v17, %v797_v18  ;;  %v1163_v24 = vadd.f32 %v1162_v50, %v1161_v48 }
 0x10c   :  { %v1137_v51 = vpop.f32.mrf.mxu0  ;;  %v1164_v52 = vpop.f32.mrf.mxu1 }
 0x10d   :  { %v1138_v0 = vadd.f32 %v1137_v51, %v1136_v49  ;;  %v895_v34 = vadd.f32 %v1163_v24, %v846_v23 }
 0x10e   :  { %v1139_v56 = vpop.f32.mrf.mxu0  ;;  %v1165_v57 = vpop.f32.mrf.mxu1 }
 0x10f   :  { %v851_v10 = vadd.f32 %v1138_v0, %v802_v3  ;;  %v1166_v11 = vadd.f32 %v1165_v57, %v1164_v52 }
 0x110   :  { %v1140_v1 = vpop.f32.mrf.mxu0  ;;  %v1167_v2 = vpop.f32.mrf.mxu1 }
 0x111   :  { %v1141_v12 = vadd.f32 %v1140_v1, %v1139_v56  ;;  %v900_v21 = vadd.f32 %v1166_v11, %v851_v10 }
 0x112   :  { %v1168_v13 = vpop.f32.mrf.mxu1 }
 0x113   :  { %v854_v19 = vadd.f32 %v1141_v12, %v805_v14  ;;  %v1169_v20 = vadd.f32 %v1168_v13, %v1167_v2 }
 0x115   :  { %v903_v30 = vadd.f32 %v1169_v20, %v854_v19 }
 0x122   :  { %v1198_v22 = vpop.f32.mrf.mxu0 }
 0x123   :  { %v949_v25 = vadd.f32 %v1198_v22, %v900_v21 }
 0x124   :  { %v940_v27 = vpop.f32.mrf.mxu0 }
 0x125   :  { %v957_v28 = vmax.f32 %v949_v25, 0.0  ;;  %v941_v29 = vadd.f32 %v940_v27, %v892_v26 }
 0x126   :  { %v1199_v31 = vpop.f32.mrf.mxu0 }
 0x127   :  { %961 = vst [vmem:[%s1606_s3 + $0x10] sm:$0xff] %v957_v28  ;;  %v955_v32 = vmax.f32 %v941_v29, 0.0  ;;  %v952_v33 = vadd.f32 %v1199_v31, %v903_v30 }
 0x128   :  { %v943_v35 = vpop.f32.mrf.mxu0 }
 0x129   :  { %959 = vst [vmem:[%s1606_s3] sm:$0xff] %v955_v32  ;;  %v958_v36 = vmax.f32 %v952_v33, 0.0  ;;  %v944_v37 = vadd.f32 %v943_v35, %v895_v34 }
 0x12b   :  { %962 = vst [vmem:[%s1606_s3 + $0x18] sm:$0xff] %v958_v36  ;;  %v956_v38 = vmax.f32 %v944_v37, 0.0 }
 0x12d   :  { %960 = vst [vmem:[%s1606_s3 + $0x8] sm:$0xff] %v956_v38 }

</bundles_post_ra>
